<compile_context>
chip_gen: v7x
topology: tpu7x:2x2x1
jax: 0.10.0
libtpu: 0.0.40
codegen_flags: <defaults>
</compile_context>

<pallas_src>
import math
import functools

import jax
import jax.numpy as jnp
from jax.experimental import pallas as pl
from jax.experimental.pallas import tpu as pltpu


# ----------------------------- attention core -------------------------------

def _attention_core(q, k, v, o_ref, *, n_heads, d_k):
    """q, k, v: (tm, D) float32 row blocks; q already carries 1/sqrt(d_k).

    The reference attends over the HEADS axis per (batch, seq) row:
        score[m, h, t] = sum_d q[m, h*d_k + d] * k[m, t*d_k + d]
    H and d_k are tiny, so this runs on the VPU with the key-head axis
    unrolled at trace time; no (tm, H, H, d_k) temporary is ever formed and
    all reduces are over the minor (lane) axis.
    """
    tm, d_model = q.shape
    H, dk = n_heads, d_k
    qh = q.reshape(tm, H, dk)

    # score[:, :, t] for each key-head t: broadcast-multiply + lane reduce.
    score = jnp.concatenate(
        [jnp.sum(qh * k[:, t * dk:(t + 1) * dk][:, None, :],
                 axis=-1, keepdims=True)                       # (tm, H, 1)
         for t in range(H)],
        axis=-1)                                               # (tm, H, H)

    m = jnp.max(score, axis=-1, keepdims=True)
    e = jnp.exp(score - m)
    # Softmax denominator on the EUP (approx reciprocal) instead of a VPU divide.
    attn = e * pl.reciprocal(jnp.sum(e, axis=-1, keepdims=True), approx=True)

    # out[:, h, :] = sum_t attn[:, h, t] * v[:, t*dk:(t+1)*dk], accumulated per t.
    acc = attn[:, :, 0][:, :, None] * v[:, 0:dk][:, None, :]   # (tm, H, dk)
    for t in range(1, H):
        acc = acc + attn[:, :, t][:, :, None] * v[:, t * dk:(t + 1) * dk][:, None, :]

    # Lane-dense store over the full d_model extent.
    o_ref[...] = acc.reshape(tm, d_model).astype(o_ref.dtype)


# ------------------------------ Pallas kernels -------------------------------

def _mha_kernel_shared(x_ref, w_ref, b_ref, o_ref, *, n_heads, d_k, d_model):
    """Self-attention path (query is key is value): ONE fused projection."""
    D = d_model
    x = x_ref[...].astype(jnp.bfloat16)            # bf16 MXU operands
    qkv = jnp.dot(x, w_ref[...],                    # (tm, 3D), f32 accumulation
                  preferred_element_type=jnp.float32) + b_ref[...]
    q = qkv[:, 0:D]
    k = qkv[:, D:2 * D]
    v = qkv[:, 2 * D:3 * D]
    _attention_core(q, k, v, o_ref, n_heads=n_heads, d_k=d_k)


def _mha_kernel_distinct(q_ref, k_ref, v_ref, w_ref, b_ref, o_ref,
                         *, n_heads, d_k, d_model):
    """Cross-attention path: distinct q/k/v streams, per-projection matmuls
    against lane slices of the packed (D, 3D) weight."""
    D = d_model
    w = w_ref[...]
    b = b_ref[...]
    q = jnp.dot(q_ref[...].astype(jnp.bfloat16), w[:, 0:D],
                preferred_element_type=jnp.float32) + b[:, 0:D]
    k = jnp.dot(k_ref[...].astype(jnp.bfloat16), w[:, D:2 * D],
                preferred_element_type=jnp.float32) + b[:, D:2 * D]
    v = jnp.dot(v_ref[...].astype(jnp.bfloat16), w[:, 2 * D:3 * D],
                preferred_element_type=jnp.float32) + b[:, 2 * D:3 * D]
    _attention_core(q, k, v, o_ref, n_heads=n_heads, d_k=d_k)


# --------------------------------- wrapper -----------------------------------

def _pick_row_tile(m_rows):
    # ~256-row blocks: big enough to amortize the ~0.35us/step pipeline
    # overhead and fill the MXU, small enough that (row blocks + resident
    # bf16 packed weights) stay inside v7x's 64 MiB/TC VMEM even with both
    # cores active under "parallel"; single-TC v5e/v6e (128 MiB) simply see
    # fewer, fatter steps.  Small problems use one full block (full-extent
    # blocks are exempt from the 8-row divisibility rule) instead of being
    # shredded into tiny, overhead-dominated tiles.
    target = 256
    return m_rows if m_rows <= target else target


def fused_mha_forward(query, key, value, w_packed, b_packed, n_heads):
    """query/key/value: (B, S, D).
    w_packed: (D, 3D) bf16, [Wq*scale | Wk | Wv].
    b_packed: (1, 3D) f32,  [bq*scale | bk | bv]."""
    B, S, D = query.shape
    d_k = D // n_heads
    M = B * S

    shared = (query is key) and (key is value)

    tm = _pick_row_tile(M)
    m_pad = (-M) % tm                       # zero-pad rows so the grid divides
    grid = ((M + m_pad) // tm,)

    def prep(x):
        x2 = x.reshape(M, D)
        if m_pad:
            x2 = jnp.pad(x2, ((0, m_pad), (0, 0)))
        return x2

    row_spec = pl.BlockSpec((tm, D), lambda i: (i, 0))
    w_spec = pl.BlockSpec((D, 3 * D), lambda i: (0, 0))   # constant -> resident
    b_spec = pl.BlockSpec((1, 3 * D), lambda i: (0, 0))

    compiler_params = pltpu.CompilerParams(
        dimension_semantics=("parallel",),        # v7x: 2 TCs split the rows
        vmem_limit_bytes=64 * 1024 * 1024,        # explicit; <= physical on all gens
    )
    out_shape = jax.ShapeDtypeStruct((M + m_pad, D), query.dtype)

    if shared:
        kern = functools.partial(_mha_kernel_shared,
                                 n_heads=n_heads, d_k=d_k, d_model=D)
        out2 = pl.pallas_call(
            kern, out_shape=out_shape, grid=grid,
            in_specs=[row_spec, w_spec, b_spec],
            out_specs=row_spec,
            compiler_params=compiler_params,
        )(prep(query), w_packed, b_packed)
    else:
        kern = functools.partial(_mha_kernel_distinct,
                                 n_heads=n_heads, d_k=d_k, d_model=D)
        out2 = pl.pallas_call(
            kern, out_shape=out_shape, grid=grid,
            in_specs=[row_spec, row_spec, row_spec, w_spec, b_spec],
            out_specs=row_spec,
            compiler_params=compiler_params,
        )(prep(query), prep(key), prep(value), w_packed, b_packed)

    if m_pad:
        out2 = out2[:M]
    return out2.reshape(B, S, D)


# --------------------------- Module-level wrapper ----------------------------

class MultiHeadAttentionPallas:
    """Pallas port of MultiHeadAttention (eval mode: dropout is identity)."""

    def __init__(self, n_heads, d_model, key):
        assert d_model % n_heads == 0
        self.n_heads = n_heads
        self.d_model = d_model
        self.d_k = d_model // n_heads
        bound = 1.0 / math.sqrt(d_model)
        ks = jax.random.split(key, 6)
        # nn.Linear stores W as (out, in); we keep W^T (in, out) for x @ W^T.
        init = lambda k, shape: jax.random.uniform(
            k, shape, jnp.float32, minval=-bound, maxval=bound)
        self.wq_t = init(ks[0], (d_model, d_model))
        self.bq = init(ks[1], (d_model,))
        self.wk_t = init(ks[2], (d_model, d_model))
        self.bk = init(ks[3], (d_model,))
        self.wv_t = init(ks[4], (d_model, d_model))
        self.bv = init(ks[5], (d_model,))

        # Kernel-side parameters, prepared ONCE at init (zero per-call cost):
        #  * 1/sqrt(d_k) softmax scale folded into the q projection,
        #  * the three projections packed into one (D, 3D) matrix,
        #  * weights cast to bf16 (full-rate MXU path, half the DMA bytes);
        #    biases stay f32 and are added after the f32 accumulation.
        scale = 1.0 / math.sqrt(self.d_k)
        self.w_packed = jnp.concatenate(
            [self.wq_t * scale, self.wk_t, self.wv_t], axis=1
        ).astype(jnp.bfloat16)
        self.b_packed = jnp.concatenate(
            [self.bq * scale, self.bk, self.bv]).reshape(1, 3 * d_model)

    def __call__(self, query, key, value, mask=None):
        # TODO(synk): mask (masked_fill) and training-mode dropout on `attn`
        # are not implemented — forward assumes mask=None, eval mode.
        return fused_mha_forward(query, key, value,
                                 self.w_packed, self.b_packed, self.n_heads)


# --------------------------------- Reference ---------------------------------

def reference_forward(m, query, key, value):
    B = query.shape[0]
    q = (query @ m.wq_t + m.bq).reshape(B, -1, m.n_heads, m.d_k)
    k = (key @ m.wk_t + m.bk).reshape(B, -1, m.n_heads, m.d_k)
    v = (value @ m.wv_t + m.bv).reshape(B, -1, m.n_heads, m.d_k)
    score = jnp.einsum('bshd,bstd->bsht', q, k) / math.sqrt(m.d_k)
    attn = jax.nn.softmax(score, axis=-1)
    out = jnp.einsum('bsht,bstd->bshd', attn, v)
    return out.reshape(B, -1, m.n_heads * m.d_k)


# ----------------------------------- Main ------------------------------------

if __name__ == "__main__":
    B, S, D_MODEL, N_HEADS = 2, 8, 32, 4

    root = jax.random.PRNGKey(0)
    k_params, k_q, k_k, k_v = jax.random.split(root, 4)

    mha = MultiHeadAttentionPallas(N_HEADS, D_MODEL, k_params)

    query = jax.random.normal(k_q, (B, S, D_MODEL), jnp.float32)
    key = jax.random.normal(k_k, (B, S, D_MODEL), jnp.float32)
    value = jax.random.normal(k_v, (B, S, D_MODEL), jnp.float32)

    # Tolerance accounts for bf16 MXU operands + approx (EUP) reciprocal.
    TOL = dict(atol=2e-2, rtol=2e-2)

    # Cross-attention path (distinct q/k/v streams).
    out = jax.block_until_ready(mha(query, key, value))
    assert out.shape == (B, S, D_MODEL), out.shape
    ref = reference_forward(mha, query, key, value)
    assert jnp.allclose(out, ref, **TOL), "cross-attn mismatch vs reference"

    # Self-attention path (q is k is v): single input stream, one (D,3D) matmul.
    out_self = jax.block_until_ready(mha(query, query, query))
    ref_self = reference_forward(mha, query, query, query)
    assert jnp.allclose(out_self, ref_self, **TOL), "self-attn mismatch vs reference"

    print("KERNEL_OK")
</pallas_src>

<mosaic_0001>
module attributes {stable_mosaic.version = 11 : i64} {
  func.func @_mha_kernel_distinct(%arg0: i32, %arg1: memref<16x32xf32, #tpu.memory_space<vmem>>, %arg2: memref<16x32xf32, #tpu.memory_space<vmem>>, %arg3: memref<16x32xf32, #tpu.memory_space<vmem>>, %arg4: memref<32x96xbf16, #tpu.memory_space<vmem>>, %arg5: memref<1x96xf32, #tpu.memory_space<vmem>>, %arg6: memref<16x32xf32, #tpu.memory_space<vmem>>) attributes {dimension_semantics = [#tpu.dimension_semantics<parallel>], iteration_bounds = array<i64: 1>, scalar_prefetch = 0 : i64, scratch_operands = 0 : i64, tpu.core_type = #tpu.core_type<tc>, window_params = [{transform_indices = @transform_0, window_bounds = array<i64: 16, 32>}, {transform_indices = @transform_1, window_bounds = array<i64: 16, 32>}, {transform_indices = @transform_2, window_bounds = array<i64: 16, 32>}, {pipeline_mode = #tpu.pipeline_mode<synchronous>, transform_indices = @transform_3, window_bounds = array<i64: 32, 96>}, {pipeline_mode = #tpu.pipeline_mode<synchronous>, transform_indices = @transform_4, window_bounds = array<i64: 1, 96>}, {transform_indices = @transform_5, window_bounds = array<i64: 16, 32>}]} {
    %c0 = arith.constant 0 : index
    %c0_0 = arith.constant 0 : index
    %0 = vector.load %arg4[%c0, %c0_0] : memref<32x96xbf16, #tpu.memory_space<vmem>>, vector<32x96xbf16>
    %c0_1 = arith.constant 0 : index
    %c0_2 = arith.constant 0 : index
    %1 = vector.load %arg5[%c0_1, %c0_2] : memref<1x96xf32, #tpu.memory_space<vmem>>, vector<1x96xf32>
    %c0_3 = arith.constant 0 : index
    %c0_4 = arith.constant 0 : index
    %2 = vector.load %arg1[%c0_3, %c0_4] : memref<16x32xf32, #tpu.memory_space<vmem>>, vector<16x32xf32>
    %3 = arith.truncf %2 : vector<16x32xf32> to vector<16x32xbf16>
    %4 = vector.extract_strided_slice %0 {offsets = [0, 0], sizes = [32, 32], strides = [1, 1]} : vector<32x96xbf16> to vector<32x32xbf16>
    %cst = arith.constant dense<0.000000e+00> : vector<16x32xf32>
    %5 = tpu.matmul %3, %4, %cst {dimension_numbers = #tpu.dot_dimension_numbers<[1], [0], [0], [1], [0, 0, 1, 1], [], []>} : vector<16x32xbf16>, vector<32x32xbf16>, vector<16x32xf32> -> vector<16x32xf32>
    %6 = vector.extract_strided_slice %1 {offsets = [0, 0], sizes = [1, 32], strides = [1, 1]} : vector<1x96xf32> to vector<1x32xf32>
    %7 = vector.broadcast %6 : vector<1x32xf32> to vector<16x32xf32>
    %8 = arith.addf %5, %7 : vector<16x32xf32>
    %c0_5 = arith.constant 0 : index
    %c0_6 = arith.constant 0 : index
    %9 = vector.load %arg2[%c0_5, %c0_6] : memref<16x32xf32, #tpu.memory_space<vmem>>, vector<16x32xf32>
    %10 = arith.truncf %9 : vector<16x32xf32> to vector<16x32xbf16>
    %11 = vector.extract_strided_slice %0 {offsets = [0, 32], sizes = [32, 32], strides = [1, 1]} : vector<32x96xbf16> to vector<32x32xbf16>
    %cst_7 = arith.constant dense<0.000000e+00> : vector<16x32xf32>
    %12 = tpu.matmul %10, %11, %cst_7 {dimension_numbers = #tpu.dot_dimension_numbers<[1], [0], [0], [1], [0, 0, 1, 1], [], []>} : vector<16x32xbf16>, vector<32x32xbf16>, vector<16x32xf32> -> vector<16x32xf32>
    %13 = vector.extract_strided_slice %1 {offsets = [0, 32], sizes = [1, 32], strides = [1, 1]} : vector<1x96xf32> to vector<1x32xf32>
    %14 = vector.broadcast %13 : vector<1x32xf32> to vector<16x32xf32>
    %15 = arith.addf %12, %14 : vector<16x32xf32>
    %c0_8 = arith.constant 0 : index
    %c0_9 = arith.constant 0 : index
    %16 = vector.load %arg3[%c0_8, %c0_9] : memref<16x32xf32, #tpu.memory_space<vmem>>, vector<16x32xf32>
    %17 = arith.truncf %16 : vector<16x32xf32> to vector<16x32xbf16>
    %18 = vector.extract_strided_slice %0 {offsets = [0, 64], sizes = [32, 32], strides = [1, 1]} : vector<32x96xbf16> to vector<32x32xbf16>
    %cst_10 = arith.constant dense<0.000000e+00> : vector<16x32xf32>
    %19 = tpu.matmul %17, %18, %cst_10 {dimension_numbers = #tpu.dot_dimension_numbers<[1], [0], [0], [1], [0, 0, 1, 1], [], []>} : vector<16x32xbf16>, vector<32x32xbf16>, vector<16x32xf32> -> vector<16x32xf32>
    %20 = vector.extract_strided_slice %1 {offsets = [0, 64], sizes = [1, 32], strides = [1, 1]} : vector<1x96xf32> to vector<1x32xf32>
    %21 = vector.broadcast %20 : vector<1x32xf32> to vector<16x32xf32>
    %22 = arith.addf %19, %21 : vector<16x32xf32>
    %23 = vector.shape_cast %8 : vector<16x32xf32> to vector<16x4x8xf32>
    %24 = vector.extract_strided_slice %15 {offsets = [0, 0], sizes = [16, 8], strides = [1, 1]} : vector<16x32xf32> to vector<16x8xf32>
    %25 = vector.shape_cast %24 : vector<16x8xf32> to vector<16x1x8xf32>
    %26 = vector.broadcast %25 : vector<16x1x8xf32> to vector<16x4x8xf32>
    %27 = arith.mulf %23, %26 : vector<16x4x8xf32>
    %cst_11 = arith.constant dense<0.000000e+00> : vector<16x4xf32>
    %28 = vector.multi_reduction <add>, %27, %cst_11 [2] : vector<16x4x8xf32> to vector<16x4xf32>
    %29 = vector.shape_cast %28 : vector<16x4xf32> to vector<16x4x1xf32>
    %30 = vector.extract_strided_slice %15 {offsets = [0, 8], sizes = [16, 8], strides = [1, 1]} : vector<16x32xf32> to vector<16x8xf32>
    %31 = vector.shape_cast %30 : vector<16x8xf32> to vector<16x1x8xf32>
    %32 = vector.broadcast %31 : vector<16x1x8xf32> to vector<16x4x8xf32>
    %33 = arith.mulf %23, %32 : vector<16x4x8xf32>
    %cst_12 = arith.constant dense<0.000000e+00> : vector<16x4xf32>
    %34 = vector.multi_reduction <add>, %33, %cst_12 [2] : vector<16x4x8xf32> to vector<16x4xf32>
    %35 = vector.shape_cast %34 : vector<16x4xf32> to vector<16x4x1xf32>
    %36 = vector.extract_strided_slice %15 {offsets = [0, 16], sizes = [16, 8], strides = [1, 1]} : vector<16x32xf32> to vector<16x8xf32>
    %37 = vector.shape_cast %36 : vector<16x8xf32> to vector<16x1x8xf32>
    %38 = vector.broadcast %37 : vector<16x1x8xf32> to vector<16x4x8xf32>
    %39 = arith.mulf %23, %38 : vector<16x4x8xf32>
    %cst_13 = arith.constant dense<0.000000e+00> : vector<16x4xf32>
    %40 = vector.multi_reduction <add>, %39, %cst_13 [2] : vector<16x4x8xf32> to vector<16x4xf32>
    %41 = vector.shape_cast %40 : vector<16x4xf32> to vector<16x4x1xf32>
    %42 = vector.extract_strided_slice %15 {offsets = [0, 24], sizes = [16, 8], strides = [1, 1]} : vector<16x32xf32> to vector<16x8xf32>
    %43 = vector.shape_cast %42 : vector<16x8xf32> to vector<16x1x8xf32>
    %44 = vector.broadcast %43 : vector<16x1x8xf32> to vector<16x4x8xf32>
    %45 = arith.mulf %23, %44 : vector<16x4x8xf32>
    %cst_14 = arith.constant dense<0.000000e+00> : vector<16x4xf32>
    %46 = vector.multi_reduction <add>, %45, %cst_14 [2] : vector<16x4x8xf32> to vector<16x4xf32>
    %47 = vector.shape_cast %46 : vector<16x4xf32> to vector<16x4x1xf32>
    %48 = tpu.concatenate %29, %35, %41, %47 in 2 : vector<16x4x1xf32>, vector<16x4x1xf32>, vector<16x4x1xf32>, vector<16x4x1xf32> -> vector<16x4x4xf32>
    %cst_15 = arith.constant dense<0xFF800000> : vector<16x4xf32>
    %49 = vector.multi_reduction <maximumf>, %48, %cst_15 [2] : vector<16x4x4xf32> to vector<16x4xf32>
    %50 = vector.shape_cast %49 : vector<16x4xf32> to vector<16x4x1xf32>
    %51 = vector.broadcast %50 : vector<16x4x1xf32> to vector<16x4x4xf32>
    %52 = arith.subf %48, %51 : vector<16x4x4xf32>
    %53 = math.exp %52 : vector<16x4x4xf32>
    %cst_16 = arith.constant dense<0.000000e+00> : vector<16x4xf32>
    %54 = vector.multi_reduction <add>, %53, %cst_16 [2] : vector<16x4x4xf32> to vector<16x4xf32>
    %55 = vector.shape_cast %54 : vector<16x4xf32> to vector<16x4x1xf32>
    %56 = tpu.reciprocal %55 {approx = true} : vector<16x4x1xf32> -> vector<16x4x1xf32>
    %57 = vector.broadcast %56 : vector<16x4x1xf32> to vector<16x4x4xf32>
    %58 = arith.mulf %53, %57 : vector<16x4x4xf32>
    %59 = vector.extract_strided_slice %58 {offsets = [0, 0, 0], sizes = [16, 4, 1], strides = [1, 1, 1]} : vector<16x4x4xf32> to vector<16x4x1xf32>
    %60 = vector.shape_cast %59 : vector<16x4x1xf32> to vector<16x4xf32>
    %61 = vector.shape_cast %60 : vector<16x4xf32> to vector<16x4x1xf32>
    %62 = vector.extract_strided_slice %22 {offsets = [0, 0], sizes = [16, 8], strides = [1, 1]} : vector<16x32xf32> to vector<16x8xf32>
    %63 = vector.shape_cast %62 : vector<16x8xf32> to vector<16x1x8xf32>
    %64 = vector.broadcast %61 : vector<16x4x1xf32> to vector<16x4x8xf32>
    %65 = vector.broadcast %63 : vector<16x1x8xf32> to vector<16x4x8xf32>
    %66 = arith.mulf %64, %65 : vector<16x4x8xf32>
    %67 = vector.extract_strided_slice %58 {offsets = [0, 0, 1], sizes = [16, 4, 1], strides = [1, 1, 1]} : vector<16x4x4xf32> to vector<16x4x1xf32>
    %68 = vector.shape_cast %67 : vector<16x4x1xf32> to vector<16x4xf32>
    %69 = vector.shape_cast %68 : vector<16x4xf32> to vector<16x4x1xf32>
    %70 = vector.extract_strided_slice %22 {offsets = [0, 8], sizes = [16, 8], strides = [1, 1]} : vector<16x32xf32> to vector<16x8xf32>
    %71 = vector.shape_cast %70 : vector<16x8xf32> to vector<16x1x8xf32>
    %72 = vector.broadcast %69 : vector<16x4x1xf32> to vector<16x4x8xf32>
    %73 = vector.broadcast %71 : vector<16x1x8xf32> to vector<16x4x8xf32>
    %74 = arith.mulf %72, %73 : vector<16x4x8xf32>
    %75 = arith.addf %66, %74 : vector<16x4x8xf32>
    %76 = vector.extract_strided_slice %58 {offsets = [0, 0, 2], sizes = [16, 4, 1], strides = [1, 1, 1]} : vector<16x4x4xf32> to vector<16x4x1xf32>
    %77 = vector.shape_cast %76 : vector<16x4x1xf32> to vector<16x4xf32>
    %78 = vector.shape_cast %77 : vector<16x4xf32> to vector<16x4x1xf32>
    %79 = vector.extract_strided_slice %22 {offsets = [0, 16], sizes = [16, 8], strides = [1, 1]} : vector<16x32xf32> to vector<16x8xf32>
    %80 = vector.shape_cast %79 : vector<16x8xf32> to vector<16x1x8xf32>
    %81 = vector.broadcast %78 : vector<16x4x1xf32> to vector<16x4x8xf32>
    %82 = vector.broadcast %80 : vector<16x1x8xf32> to vector<16x4x8xf32>
    %83 = arith.mulf %81, %82 : vector<16x4x8xf32>
    %84 = arith.addf %75, %83 : vector<16x4x8xf32>
    %85 = vector.extract_strided_slice %58 {offsets = [0, 0, 3], sizes = [16, 4, 1], strides = [1, 1, 1]} : vector<16x4x4xf32> to vector<16x4x1xf32>
    %86 = vector.shape_cast %85 : vector<16x4x1xf32> to vector<16x4xf32>
    %87 = vector.shape_cast %86 : vector<16x4xf32> to vector<16x4x1xf32>
    %88 = vector.extract_strided_slice %22 {offsets = [0, 24], sizes = [16, 8], strides = [1, 1]} : vector<16x32xf32> to vector<16x8xf32>
    %89 = vector.shape_cast %88 : vector<16x8xf32> to vector<16x1x8xf32>
    %90 = vector.broadcast %87 : vector<16x4x1xf32> to vector<16x4x8xf32>
    %91 = vector.broadcast %89 : vector<16x1x8xf32> to vector<16x4x8xf32>
    %92 = arith.mulf %90, %91 : vector<16x4x8xf32>
    %93 = arith.addf %84, %92 : vector<16x4x8xf32>
    %94 = vector.shape_cast %93 : vector<16x4x8xf32> to vector<16x32xf32>
    %c0_17 = arith.constant 0 : index
    %c0_18 = arith.constant 0 : index
    %95 = vector.load %arg6[%c0_17, %c0_18] : memref<16x32xf32, #tpu.memory_space<vmem>>, vector<16x32xf32>
    tpu.vector_store %arg6[%c0_17, %c0_18], %94 {strides = array<i32>} : memref<16x32xf32, #tpu.memory_space<vmem>>, vector<16x32xf32>,
    return
  }
  func.func @transform_0(%arg0: i32) -> (i32, i32) {
    %c0_i32 = arith.constant 0 : i32
    %c0_i32_0 = arith.constant 0 : i32
    return %arg0, %c0_i32 : i32, i32
  }
  func.func @transform_1(%arg0: i32) -> (i32, i32) {
    %c0_i32 = arith.constant 0 : i32
    %c0_i32_0 = arith.constant 0 : i32
    return %arg0, %c0_i32 : i32, i32
  }
  func.func @transform_2(%arg0: i32) -> (i32, i32) {
    %c0_i32 = arith.constant 0 : i32
    %c0_i32_0 = arith.constant 0 : i32
    return %arg0, %c0_i32 : i32, i32
  }
  func.func @transform_3(%arg0: i32) -> (i32, i32) {
    %c0_i32 = arith.constant 0 : i32
    %c0_i32_0 = arith.constant 0 : i32
    %c0_i32_1 = arith.constant 0 : i32
    return %c0_i32, %c0_i32_0 : i32, i32
  }
  func.func @transform_4(%arg0: i32) -> (i32, i32) {
    %c0_i32 = arith.constant 0 : i32
    %c0_i32_0 = arith.constant 0 : i32
    %c0_i32_1 = arith.constant 0 : i32
    return %c0_i32, %c0_i32_0 : i32, i32
  }
  func.func @transform_5(%arg0: i32) -> (i32, i32) {
    %c0_i32 = arith.constant 0 : i32
    %c0_i32_0 = arith.constant 0 : i32
    return %arg0, %c0_i32 : i32, i32
  }
}

</mosaic_0001>

<bundles_post_ra>
// kernel: tpu_custom_call.1
= control target key start
LH: loop header
LB: loop body
LE: loop exit
PB: predicated region body
PF: predicated region fallthrough
CT: control target
= control target key end

     0   :  { %10 = vsyncpa [#allocation3], 0  ;;  %s3705_s0 = inlined_call_operand.hbm [shape: f32[16,32], index: 0, kind: input, shape index: {}]   ;;  %s3706_s1 = inlined_call_operand.hbm [shape: f32[16,32], index: 1, kind: input, shape index: {}]   ;;  %s3707_s2 = inlined_call_operand.hbm [shape: f32[16,32], index: 2, kind: input, shape index: {}]   ;;  %s3708_s3 = inlined_call_operand.hbm [shape: bf16[32,96], index: 3, kind: input, shape index: {}]   ;;  %s3709_s4 = inlined_call_operand.hbm [shape: f32[1,96], index: 4, kind: input, shape index: {}]   ;;  %s3710_s5 = inlined_call_operand.hbm [shape: f32[16,32], index: 5, kind: output, shape index: {}]  }
   0x1   :  { %11 = vsyncpa [#allocation6], 0 }
   0x2   :  { %12 = vsyncpa [#allocation9], 0 }
   0x3   :  { %13 = vsyncpa [#allocation4], 0  ;;  %s2482_s18 = smov [#allocation5]   ;;  %s2483_s20 = smov [#allocation8]  }
   0x4   :  { %s31_s19 = sshll.u32 %s2482_s18, 4  ;;  %s55_s21 = sshll.u32 %s2483_s20, 4  ;;  %s32_s19 = int_to_ptr.vmem [resolvable:$true] %s31_s19  ;;  %s2537_s21 = int_to_ptr.vmem [resolvable:$true] %s55_s21 }
   0x5   :  { %s2342_s24 = scalar_lea.hbm %s3706_s1, 256 }
   0x6   :  { %p2343_p0 = scmp.ne.s32.totalorder %s3706_s1, %s2342_s24  ;;  %p2346_p1 = scmp.lt.u32.totalorder %s2342_s24, %s3706_s1 }
   0x8   :  { %p2348_p2 = pnand %p2346_p1, %p2343_p0 }
   0xa   :  { %2351 = shalt.err (!%p2348_p2)
}
   0xb   :  { %s2352_s29 = scalar_lea.vmem %s32_s19, 256  ;;  %p2357_p4 = scmp.lt.s32.totalorder %s32_s19, %s32_s19 }
   0xc   :  { %p2353_p3 = scmp.ne.s32.totalorder %s32_s19, %s2352_s29  ;;  %p2358_p5 = scmp.lt.s32.totalorder %s2352_s29, %s2352_s29 }
   0xe   :  { %p2359_p6 = por %p2358_p5, %p2357_p4 }
  0x10   :  { %p2360_p7 = pnand %p2359_p6, %p2353_p3 }
  0x12   :  { %2363 = shalt.err (!%p2360_p7)
}
  0x13   :  { %s2484_s30 = smov 128   ;;  %s2485_s6 = smov 8  }
  0x14   :  { %37 = dma.hbm_to_vmem [thread:$0]  %s3706_s1, 256, %s32_s19, [#allocation6], %s2484_s30, %s2484_s30, %s2485_s6  }
  0x15   :  { %s2364_s11 = scalar_lea.hbm %s3708_s3, 256 }
  0x16   :  { %p2365_p8 = scmp.ne.s32.totalorder %s3708_s3, %s2364_s11  ;;  %p2368_p9 = scmp.lt.u32.totalorder %s2364_s11, %s3708_s3 }
  0x18   :  { %p2370_p10 = pnand %p2368_p9, %p2365_p8 }
  0x1a   :  { %2373 = shalt.err (!%p2370_p10)
}
  0x1b   :  { %s2374_s16 = scalar_lea.vmem %s2537_s21, 256  ;;  %p2379_p12 = scmp.lt.s32.totalorder %s2537_s21, %s2537_s21 }
  0x1c   :  { %p2375_p11 = scmp.ne.s32.totalorder %s2537_s21, %s2374_s16  ;;  %p2380_p13 = scmp.lt.s32.totalorder %s2374_s16, %s2374_s16 }
  0x1e   :  { %p2381_p0 = por %p2380_p13, %p2379_p12 }
  0x20   :  { %p2382_p1 = pnand %p2381_p0, %p2375_p11 }
  0x22   :  { %2385 = shalt.err (!%p2382_p1)
}
  0x23   :  { %s2486_s1 = smov 64   ;;  %s2487_s17 = smov 4  }
  0x24   :  { %61 = dma.hbm_to_vmem [thread:$0]  %s3708_s3, 256, %s2537_s21, [#allocation9], %s2486_s1, %s2486_s1, %s2487_s17  }
  0x25   :  { %s2488_s20 = smov [#allocation2]   ;;  %s2489_s23 = smov [#allocation7]  }
  0x26   :  { %s19_s22 = sshll.u32 %s2488_s20, 4  ;;  %s43_s24 = sshll.u32 %s2489_s23, 4  ;;  %s20_s22 = int_to_ptr.vmem [resolvable:$true] %s19_s22  ;;  %s2573_s24 = int_to_ptr.vmem [resolvable:$true] %s43_s24 }
  0x27   :  { %s2386_s27 = scalar_lea.hbm %s3705_s0, 256 }
  0x28   :  { %p2387_p2 = scmp.ne.s32.totalorder %s3705_s0, %s2386_s27  ;;  %p2390_p3 = scmp.lt.u32.totalorder %s2386_s27, %s3705_s0 }
  0x2a   :  { %p2392_p4 = pnand %p2390_p3, %p2387_p2 }
  0x2c   :  { %2395 = shalt.err (!%p2392_p4)
}
  0x2d   :  { %s2396_s3 = scalar_lea.vmem %s20_s22, 256  ;;  %p2401_p6 = scmp.lt.s32.totalorder %s20_s22, %s20_s22 }
  0x2e   :  { %p2397_p5 = scmp.ne.s32.totalorder %s20_s22, %s2396_s3  ;;  %p2402_p7 = scmp.lt.s32.totalorder %s2396_s3, %s2396_s3 }
  0x30   :  { %p2403_p8 = por %p2402_p7, %p2401_p6 }
  0x32   :  { %p2404_p9 = pnand %p2403_p8, %p2397_p5 }
  0x34   :  { %2407 = shalt.err (!%p2404_p9)
}
  0x35   :  { %25 = dma.hbm_to_vmem [thread:$0]  %s3705_s0, 256, %s20_s22, [#allocation3], %s2484_s30, %s2484_s30, %s2485_s6  }
  0x36   :  { %s2408_s12 = scalar_lea.hbm %s3707_s2, 256 }
  0x37   :  { %p2409_p10 = scmp.ne.s32.totalorder %s3707_s2, %s2408_s12  ;;  %p2412_p11 = scmp.lt.u32.totalorder %s2408_s12, %s3707_s2 }
  0x39   :  { %p2414_p12 = pnand %p2412_p11, %p2409_p10 }
  0x3b   :  { %2417 = shalt.err (!%p2414_p12)
}
  0x3c   :  { %s2418_s17 = scalar_lea.vmem %s2573_s24, 256  ;;  %p2423_p0 = scmp.lt.s32.totalorder %s2573_s24, %s2573_s24 }
  0x3d   :  { %p2419_p13 = scmp.ne.s32.totalorder %s2573_s24, %s2418_s17  ;;  %p2424_p1 = scmp.lt.s32.totalorder %s2418_s17, %s2418_s17 }
  0x3f   :  { %p2425_p2 = por %p2424_p1, %p2423_p0 }
  0x41   :  { %p2426_p3 = pnand %p2425_p2, %p2419_p13 }
  0x43   :  { %2429 = shalt.err (!%p2426_p3)
}
  0x44   :  { %49 = dma.hbm_to_vmem [thread:$0]  %s3707_s2, 256, %s2573_s24, [#allocation6], %s2484_s30, %s2484_s30, %s2485_s6  }
  0x45   :  { %s2490_s19 = smov [#allocation10]   ;;  %s2430_s25 = scalar_lea.hbm %s3709_s4, 16 }
  0x46   :  { %s68_s20 = sshll.u32 %s2490_s19, 4  ;;  %p2431_p4 = scmp.ne.s32.totalorder %s3709_s4, %s2430_s25  ;;  %s69_s20 = int_to_ptr.vmem [resolvable:$true] %s68_s20 }
  0x47   :  { %p2434_p5 = scmp.lt.u32.totalorder %s2430_s25, %s3709_s4 }
  0x49   :  { %p2436_p6 = pnand %p2434_p5, %p2431_p4 }
  0x4b   :  { %2439 = shalt.err (!%p2436_p6)
}
  0x4c   :  { %s2440_s7 = scalar_lea.vmem %s69_s20, 16  ;;  %s2444_s2 = scalar_lea.vmem %s69_s20, 32 }
  0x4d   :  { %p2441_p7 = scmp.ne.s32.totalorder %s69_s20, %s2440_s7  ;;  %p2445_p8 = scmp.lt.s32.totalorder %s69_s20, %s69_s20 }
  0x4e   :  { %p2446_p9 = scmp.lt.s32.totalorder %s2444_s2, %s2440_s7 }
  0x50   :  { %p2447_p10 = por %p2446_p9, %p2445_p8 }
  0x52   :  { %p2448_p11 = pnand %p2447_p10, %p2441_p7 }
  0x54   :  { %2451 = shalt.err (!%p2448_p11)
}
  0x55   :  { %71 = dma.hbm_to_vmem [thread:$0]  %s3709_s4, 16, %s69_s20, [#allocation9]  }
  0x56   :  { %2474 = dma.done.wait [#allocation3], 256  }
  0x57   :  { %2475 = vsyncadd [#allocation3], 4294967040 }
  0x58   :  { %2476 = dma.done.wait [#allocation6], 512  }
  0x59   :  { %2477 = vsyncadd [#allocation6], 4294966784 }
  0x5a   :  { %2478 = dma.done.wait [#allocation9], 272  }
  0x5b   :  { %2479 = vsyncadd [#allocation9], 4294967024  ;;  %v2491_v0 = vmov 0.0   ;;  %vm2492_vm0 = vmmov 0   ;;  %v2276_v1 = vld [vmem:[#allocation8] sm:$0xff]   ;;  %v2277_v2 = vld [vmem:[#allocation8 + $0x8] sm:$0xff]   ;;  %v296_v25 = vlaneseq }
  0x5c   :  { %2197 = vmatprep.subr.bf16.mxu0 %v2491_v0  ;;  %2201 = vmatprep.mubr.msk.bf16.mxu0 %vm2492_vm0, %v2491_v0  ;;  %s2493_s4 = smov 96   ;;  %v93_v3 = vld [vmem:[#allocation2] sm:$0xff]  ;;  %v94_v4 = vld [vmem:[#allocation2 + $0x8] sm:$0xff]  ;;  %vm114_vm1 = vcmask 261120   ;;  %v159_v8 = vld [vmem:[#allocation5] sm:$0xff]  ;;  %s2495_s3 = smov 112  }
  0x5d   :  { %2205 = vmatprep.subr.bf16.mxu1 %v2491_v0  ;;  %2209 = vmatprep.mubr.msk.bf16.mxu1 %vm2492_vm0, %v2491_v0  ;;  %v2182_v5 = vld [vmem:[#allocation10] ss:$0 sm:$0xff]  ;;  %v95_v6 = vpack.c.bf16 %v94_v4, %v93_v3  ;;  %v160_v9 = vld [vmem:[#allocation5 + $0x8] sm:$0xff]  ;;  %v216_v16 = vld [vmem:[#allocation7 + $0x8] sm:$0xff]  ;;  %s2496_s21 = smov 104   ;;  %v2658_v28 = vshrl.u32 %v296_v25, 7 }
  0x5e   :  { %162 = vrot.lane.b32.xlu0 %v2276_v1, %s2493_s4  ;;  %2198 = vmatpush3.bf16.msra.mxu0 %v2276_v1  ;;  %v161_v12 = vpack.c.bf16 %v160_v9, %v159_v8  ;;  %v215_v15 = vld [vmem:[#allocation7] sm:$0xff]  ;;  %v2497_v26 = vmov 1966171168   ;;  %v2498_v39 = vmov 1983009808   ;;  %vm623_vm2 = vcmask 60416  }
  0x5f   :  { %2199 = vmatprep.subr.bf16.mxu0 %v2491_v0  ;;  %168 = vrot.lane.b32.xlu1 %v2182_v5, %s2493_s4  ;;  %v217_v18 = vpack.c.bf16 %v216_v16, %v215_v15  ;;  %v431_v27 = vunpack.c.l.s4 %v2497_v26  ;;  %v294_v40 = vunpack.c.l.s4 %v2498_v39  ;;  %v2667_v41 = vsub.s32 0, %v2658_v28  ;;  %s2504_s9 = smov 16   ;;  %s2505_s10 = smov 24  }
  0x60   :  { %vm1008_vm3 = vcmask 7168   ;;  %vm1025_vm4 = vcmask 15360   ;;  %vm1042_vm5 = vcmask 23552   ;;  %vm1059_vm6 = vcmask 27648   ;;  %s2506_s11 = smov [#allocation11]  }
  0x61   :  { %v432_v29 = vunpack.c.0.s8 %v431_v27  ;;  %v295_v47 = vunpack.c.0.s8 %v294_v40  ;;  %vm2152_vm7 = vcmask 64512   ;;  %vm2155_vm8 = vcmask 130048   ;;  %s2168_s12 = sshll.u32 %s2506_s11, 4  ;;  %s2169_s12 = int_to_ptr.vmem [resolvable:$true] %s2168_s12 }
  0x62   :  { %164 = vrot.lane.b32.xlu0 %v2277_v2, %s2493_s4  ;;  %2200 = vmatpush3.bf16.msra.mxu0 %v2277_v2  ;;  %vm2158_vm9 = vcmask 195584   ;;  %s2452_s13 = scalar_lea.vmem %s2169_s12, 256  ;;  %p2457_p13 = scmp.lt.s32.totalorder %s2169_s12, %s2169_s12 }
  0x63   :  { %224 = vrot.lane.b32.xlu1 %v2182_v5, %s2486_s1  ;;  %2213 = vmatprep.subr.bf16.mxu0 %v2491_v0  ;;  %v2661_v30 = vsub.s32 %v432_v29, %v2658_v28  ;;  %v2686_v57 = vsub.s32 %v295_v47, %v2658_v28  ;;  %p2453_p12 = scmp.ne.s32.totalorder %s2169_s12, %s2452_s13  ;;  %p2458_p0 = scmp.lt.s32.totalorder %s2452_s13, %s2452_s13 }
  0x65   :  { %2202 = vmatmul.mubr.msk.bf16.vlgmr.msra.gmra.mrb[0].mxu0 %vm114_vm1, %v95_v6  ;;  %p2459_p1 = por %p2458_p0, %p2457_p13 }
  0x66   :  { %220 = vrot.lane.b32.xlu0 %v2277_v2, %s2486_s1  ;;  %2217 = vmatprep.mubr.msk.bf16.mxu0 %vm2492_vm0, %v2491_v0 }
  0x67   :  { %218 = vrot.lane.b32.xlu1 %v2276_v1, %s2486_s1  ;;  %s2494_s1 = smov 120   ;;  %p2460_p2 = pnand %p2459_p1, %p2453_p12 }
  0xd0   :  { %v163_v7 = vpop.permute.xlu0 %162 }
  0xd1   :  { %2206 = vmatpush3.bf16.msra.mxu1 %v163_v7  ;;  %v169_v10 = vpop.permute.xlu1 %168 }
  0xd2   :  { %2207 = vmatprep.subr.bf16.mxu1 %v2491_v0 }
  0xd4   :  { %v165_v11 = vpop.permute.xlu0 %164 }
  0xd5   :  { %2208 = vmatpush3.bf16.msra.mxu1 %v165_v11  ;;  %v2637_v13 = vpop.permute.xlu1 %224 }
  0xd8   :  { %2210 = vmatmul.mubr.msk.bf16.vlgmr.msra.gmra.mrb[0].mxu1 %vm114_vm1, %v161_v12  ;;  %v221_v17 = vpop.permute.xlu0 %220 }
  0xd9   :  { %v219_v14 = vpop.permute.xlu1 %218 }
  0xda   :  { %2214 = vmatpush3.bf16.msra.mxu0 %v219_v14 }
  0xdb   :  { %2215 = vmatprep.subr.bf16.mxu0 %v2491_v0 }
  0xde   :  { %2216 = vmatpush3.bf16.msra.mxu0 %v221_v17 }
  0xe1   :  { %2218 = vmatmul.mubr.msk.bf16.vlgmr.msra.gmra.mrb[4].mxu0 %vm114_vm1, %v217_v18 }
 0x138   :  { %v152_v19 = vpop.f32.mrb[0].mxu0 }
 0x139   :  { %v2642_v20 = vadd.f32 %v2182_v5, %v152_v19  ;;  %v2203_v21 = vpop.f32.mrb[1].mxu0 }
 0x13a   :  { %v155_v22 = vpop.f32.mrb[2].mxu0 }
 0x13b   :  { %v2644_v23 = vadd.f32 %v2182_v5, %v155_v22  ;;  %273 = vrot.lane.b32.xlu0 %v2642_v20, %s2494_s1  ;;  %v2204_v24 = vpop.f32.mrb[3].mxu0 }
 0x13d   :  { %275 = vrot.lane.b32.xlu1 %v2644_v23, %s2494_s1 }
 0x13f   :  { %279 = vrot.lane.b32.xlu0 %v2642_v20, %s2495_s3 }
 0x141   :  { %281 = vrot.lane.b32.xlu1 %v2644_v23, %s2495_s3 }
 0x143   :  { %285 = vrot.lane.b32.xlu0 %v2642_v20, %s2496_s21 }
 0x145   :  { %287 = vrot.lane.b32.xlu1 %v2644_v23, %s2496_s21 }
 0x1ab   :  { %v208_v31 = vpop.f32.mrb[0].mxu1 }
 0x1ac   :  { %v209_v32 = vadd.f32 %v208_v31, %v169_v10  ;;  %v2211_v33 = vpop.f32.mrb[1].mxu1 }
 0x1ad   :  { %v211_v34 = vpop.f32.mrb[2].mxu1  ;;  %v2663_v35 = vpop.permute.xlu0 %273 }
 0x1ae   :  { %v436_v36 = vrot.slane %v209_v32, %v2661_v30  ;;  %v212_v37 = vadd.f32 %v211_v34, %v169_v10  ;;  %v2212_v38 = vpop.f32.mrb[3].mxu1  ;;  %v429_v44 = vcombine.high %v209_v32, %v209_v32 }
 0x1b0   :  { %v452_v42 = vrot.slane %v436_v36, %v2661_v30  ;;  %v478_v43 = vcombine.high %v212_v37, %v212_v37  ;;  %v444_v45 = vcombine.high %v436_v36, %v436_v36  ;;  %v485_v50 = vrot.slane %v212_v37, %v2661_v30 }
 0x1b1   :  { %v2670_v46 = vpop.permute.xlu0 %279  ;;  %v443_v52 = vrot.slane %v429_v44, %v2661_v30 }
 0x1b2   :  { %v2673_v48 = vrot.slane %v452_v42, %v2667_v41  ;;  %v492_v49 = vrot.slane %v478_v43, %v2661_v30  ;;  %v2679_v53 = vrot.slane %v444_v45, %v2661_v30  ;;  %v292_v58 = vcombine.high %v2642_v20, %v2670_v46 }
 0x1b3   :  { %v493_v62 = vcombine.high %v485_v50, %v485_v50  ;;  %v2696_v1 = vrot.slane %v443_v52, %v2661_v30  ;;  %v445_v3 = vcombine.high %v443_v52, %v443_v52  ;;  %v474_v6 = vcombine.high %v452_v42, %v452_v42 }
 0x1b4   :  { %v264_v51 = vpop.f32.mrb[4].mxu0  ;;  %v494_v54 = vcombine.high %v492_v49, %v492_v49  ;;  %672 = vrot.lane.b32.xlu1 %v2673_v48, %s2494_s1  ;;  %v2700_v2 = vrot.slane %v2679_v53, %v2667_v41  ;;  %v2705_v4 = vrot.slane %v292_v58, %v2686_v57  ;;  %v2718_v9 = vrot.slane %v485_v50, %v2661_v30 }
 0x1b5   :  { %v2683_v55 = vpop.permute.xlu0 %285  ;;  %v2219_v56 = vpop.f32.mrb[5].mxu0  ;;  %v2713_v7 = vrot.slane %v493_v62, %v2661_v30  ;;  %v2722_v10 = vrot.slane %v2696_v1, %v2667_v41  ;;  %v473_v11 = vrot.slane %v445_v3, %v2661_v30  ;;  %v2730_v12 = vrot.slane %v474_v6, %v2667_v41 }
 0x1b6   :  { %v267_v59 = vpop.f32.mrb[6].mxu0  ;;  %v2691_v60 = vrot.slane %v494_v54, %v2661_v30  ;;  %v308_v63 = vcombine.high %v2663_v35, %v2683_v55  ;;  %674 = vrot.lane.b32.xlu0 %v2700_v2, %s2494_s1  ;;  %v2736_v15 = vrot.slane %v2718_v9, %v2667_v41  ;;  %v265_v16 = vadd.f32 %v264_v51, %v2637_v13 }
 0x1b7   :  { %v2220_v61 = vpop.f32.mrb[7].mxu0  ;;  %v525_v14 = vcombine.high %v2713_v7, %v2713_v7  ;;  %v268_v17 = vadd.f32 %v267_v59, %v2637_v13  ;;  %v2743_v18 = vrot.slane %v492_v49, %v2661_v30  ;;  %v477_v19 = vcombine.high %v473_v11, %v473_v11 }
 0x1b8   :  { %784 = vrot.lane.b32.xlu1 %v2673_v48, %s2495_s3  ;;  %v2708_v5 = vrot.slane %v308_v63, %v2686_v57  ;;  %v1238_v21 = vcombine.high %v265_v16, %v265_v16  ;;  %v1245_v22 = vrot.slane %v265_v16, %v2661_v30  ;;  %v476_v26 = vcombine.high %v2679_v53, %v2679_v53 }
 0x1b9   :  { %v1287_v24 = vcombine.high %v268_v17, %v268_v17  ;;  %v1294_v25 = vrot.slane %v268_v17, %v2661_v30  ;;  %v2752_v27 = vrot.slane %v477_v19, %v2667_v41  ;;  %v2755_v13 = vrot.slane %v525_v14, %v2667_v41 }
 0x1ba   :  { %v340_v8 = vcombine.high %v2705_v4, %v2708_v5  ;;  %680 = vrot.lane.b32.xlu0 %v2722_v10, %s2494_s1  ;;  %v1252_v29 = vrot.slane %v1238_v21, %v2661_v30  ;;  %v1253_v31 = vcombine.high %v1245_v22, %v1245_v22  ;;  %v1261_v32 = vrot.slane %v1245_v22, %v2661_v30 }
 0x1bb   :  { %v1301_v33 = vrot.slane %v1287_v24, %v2661_v30  ;;  %v524_v34 = vcombine.high %v2743_v18, %v2743_v18  ;;  %v1302_v36 = vcombine.high %v1294_v25, %v1294_v25  ;;  %v1310_v37 = vrot.slane %v1294_v25, %v2661_v30 }
 0x1bc   :  { %896 = vrot.lane.b32.xlu1 %v2673_v48, %s2496_s21  ;;  %v2767_v38 = vrot.slane %v2691_v60, %v2667_v41  ;;  %v1254_v39 = vcombine.high %v1252_v29, %v1252_v29  ;;  %v1268_v40 = vrot.slane %v1252_v29, %v2661_v30  ;;  %v1275_v42 = vrot.slane %v1253_v31, %v2661_v30 }
 0x1bd   :  { %v1283_v43 = vcombine.high %v1261_v32, %v1261_v32  ;;  %v2774_v44 = vrot.slane %v1261_v32, %v2667_v41  ;;  %v1303_v45 = vcombine.high %v1301_v33, %v1301_v33  ;;  %v1317_v47 = vrot.slane %v1301_v33, %v2661_v30 }
 0x1be   :  { %688 = vrot.lane.b32.xlu0 %v2736_v15, %s2494_s1  ;;  %v1324_v49 = vrot.slane %v1302_v36, %v2661_v30  ;;  %v1282_v50 = vrot.slane %v1254_v39, %v2661_v30  ;;  %v2782_v51 = vrot.slane %v1275_v42, %v2667_v41  ;;  %v2788_v53 = vrot.slane %v1268_v40, %v2667_v41 }
 0x1bf   :  { %v2785_v52 = vrot.slane %v1283_v43, %v2667_v41  ;;  %v1331_v54 = vrot.slane %v1303_v45, %v2661_v30  ;;  %v2794_v56 = vrot.slane %v476_v26, %v2667_v41  ;;  %v2797_v58 = vrot.slane %v1310_v37, %v2667_v41 }
 0x1c0   :  { %676 = vrot.lane.b32.xlu1 %v2730_v12, %s2494_s1  ;;  %v2800_v59 = vrot.slane %v524_v34, %v2667_v41  ;;  %v526_v61 = vcombine.high %v2691_v60, %v2691_v60  ;;  %v1332_v62 = vcombine.high %v1310_v37, %v1310_v37  ;;  %v2809_v30 = vrot.slane %v473_v11, %v2667_v41 }
 0x1c1   :  { %v1285_v63 = vcombine.high %v1275_v42, %v1275_v42  ;;  %v1284_v3 = vcombine.high %v1268_v40, %v1268_v40  ;;  %v1333_v6 = vcombine.high %v1317_v47, %v1317_v47  ;;  %v1334_v14 = vcombine.high %v1324_v49, %v1324_v49 }
 0x1c2   :  { %786 = vrot.lane.b32.xlu0 %v2700_v2, %s2495_s3  ;;  %v2814_v16 = vrot.slane %v526_v61, %v2667_v41  ;;  %v2817_v17 = vrot.slane %v1332_v62, %v2667_v41  ;;  %v2823_v60 = vrot.slane %v2713_v7, %v2667_v41  ;;  %v2826_v11 = vrot.slane %v1317_v47, %v2667_v41 }
 0x1c3   :  { %v2829_v19 = vrot.slane %v1285_v63, %v2667_v41  ;;  %v2832_v21 = vrot.slane %v1282_v50, %v2667_v41  ;;  %v2837_v22 = vrot.slane %v1324_v49, %v2667_v41  ;;  %v2840_v24 = vrot.slane %v1284_v3, %v2667_v41 }
 0x1c4   :  { %788 = vrot.lane.b32.xlu1 %v2730_v12, %s2495_s3  ;;  %v2843_v7 = vrot.slane %v1333_v6, %v2667_v41  ;;  %v1286_v25 = vcombine.high %v1282_v50, %v1282_v50  ;;  %v2846_v26 = vrot.slane %v1334_v14, %v2667_v41  ;;  %v2849_v29 = vrot.slane %v1331_v54, %v2667_v41 }
 0x1c5   :  { %v1335_v31 = vcombine.high %v1331_v54, %v1331_v54  ;;  %v475_v33 = vcombine.high %v2696_v1, %v2696_v1  ;;  %v523_v36 = vcombine.high %v2718_v9, %v2718_v9  ;;  %v2883_v9 = vrot.slane %v2743_v18, %v2667_v41 }
 0x1c6   :  { %792 = vrot.lane.b32.xlu0 %v2722_v10, %s2495_s3  ;;  %v2854_v32 = vrot.slane %v1286_v25, %v2667_v41  ;;  %v339_v42 = vcombine.low %v2705_v4, %v2708_v5  ;;  %v307_v45 = vcombine.low %v2663_v35, %v2683_v55  ;;  %v291_v47 = vcombine.low %v2642_v20, %v2670_v46 }
 0x1c7   :  { %v2861_v34 = vrot.slane %v1335_v31, %v2667_v41  ;;  %v2868_v37 = vrot.slane %v475_v33, %v2667_v41  ;;  %v2875_v1 = vrot.slane %v523_v36, %v2667_v41  ;;  %v2499_v41 = vmov 1934713408  }
 0x1c8   :  { %900 = vrot.lane.b32.xlu1 %v2730_v12, %s2496_s21  ;;  %v326_v18 = vunpack.c.l.s4 %v2499_v41  ;;  %v315_v50 = vrot.slane %v307_v45, %v2686_v57 }
 0x1ca   :  { %800 = vrot.lane.b32.xlu0 %v2736_v15, %s2495_s3  ;;  %v327_v39 = vunpack.c.0.s8 %v326_v18 }
 0x1cc   :  { %678 = vrot.lane.b32.xlu1 %v2794_v56, %s2494_s1  ;;  %v2906_v40 = vsub.s32 %v327_v39, %v2658_v28  ;;  %v299_v28 = vrot.slane %v291_v47, %v2686_v57 }
 0x1ce   :  { %898 = vrot.lane.b32.xlu0 %v2700_v2, %s2496_s21  ;;  %v2911_v43 = vrot.slane %v339_v42, %v2906_v40  ;;  %v323_v61 = vcombine.low %v299_v28, %v315_v50  ;;  %v324_v62 = vcombine.high %v299_v28, %v315_v50  ;;  %v2977_v45 = vrot.slane %v340_v8, %v2906_v40 }
 0x1d0   :  { %682 = vrot.lane.b32.xlu1 %v2809_v30, %s2494_s1  ;;  %v611_v49 = vmul.f32 %v2722_v10, %v2911_v43  ;;  %v2923_v63 = vrot.slane %v323_v61, %v2906_v40  ;;  %v2926_v35 = vrot.slane %v324_v62, %v2906_v40 }
 0x1d2   :  { %904 = vrot.lane.b32.xlu0 %v2722_v10, %s2496_s21  ;;  %v636_v54 = vsel %vm623_vm2, %v611_v49, 0.0  ;;  %v607_v20 = vmul.f32 %v2673_v48, %v2923_v63  ;;  %v609_v55 = vmul.f32 %v2730_v12, %v2926_v35  ;;  %v276_v48 = vpop.permute.xlu1 %275  ;;  %v2968_v41 = vcombine.high %v2926_v35, %v2491_v0 }
 0x1d3   :  { %v2981_v49 = vcombine.high %v2911_v43, %v2491_v0  ;;  %v2989_v62 = vcombine.high %v2923_v63, %v2491_v0 }
 0x1d4   :  { %690 = vrot.lane.b32.xlu1 %v2823_v60, %s2494_s1  ;;  %v624_v46 = vsel %vm623_vm2, %v607_v20, 0.0  ;;  %v630_v10 = vsel %vm623_vm2, %v609_v55, 0.0  ;;  %v610_v50 = vmul.f32 %v2794_v56, %v2968_v41 }
 0x1d5   :  { %v612_v20 = vmul.f32 %v2809_v30, %v2981_v49  ;;  %v608_v55 = vmul.f32 %v2700_v2, %v2989_v62 }
 0x1d6   :  { %912 = vrot.lane.b32.xlu0 %v2736_v15, %s2496_s21  ;;  %v282_v12 = vpop.permute.xlu1 %281  ;;  %v633_v8 = vsel %vm623_vm2, %v610_v50, 0.0 }
 0x1d7   :  { %v359_v33 = vcombine.low %v2644_v23, %v282_v12  ;;  %v360_v28 = vcombine.high %v2644_v23, %v282_v12  ;;  %v3001_v23 = vcombine.high %v2977_v45, %v2491_v0 }
 0x1d8   :  { %790 = vrot.lane.b32.xlu1 %v2794_v56, %s2495_s3 }
 0x1d9   :  { %v367_v18 = vrot.slane %v359_v33, %v2686_v57  ;;  %v614_v12 = vmul.f32 %v2752_v27, %v3001_v23  ;;  %v627_v33 = vsel %vm623_vm2, %v608_v55, 0.0 }
 0x1da   :  { %684 = vrot.lane.b32.xlu0 %v2868_v37, %s2494_s1  ;;  %v288_v3 = vpop.permute.xlu1 %287 }
 0x1db   :  { %v375_v25 = vcombine.low %v276_v48, %v288_v3  ;;  %v376_v42 = vcombine.high %v276_v48, %v288_v3 }
 0x1dc   :  { %794 = vrot.lane.b32.xlu1 %v2809_v30, %s2495_s3 }
 0x1dd   :  { %v383_v36 = vrot.slane %v375_v25, %v2686_v57 }
 0x1de   :  { %692 = vrot.lane.b32.xlu0 %v2875_v1, %s2494_s1 }
 0x1df   :  { %v391_v47 = vcombine.low %v367_v18, %v383_v36  ;;  %v392_v61 = vcombine.high %v367_v18, %v383_v36  ;;  %v613_v36 = vmul.f32 %v2868_v37, %v2977_v45 }
 0x1e0   :  { %802 = vrot.lane.b32.xlu1 %v2823_v60, %s2495_s3 }
 0x1e1   :  { %v2992_v4 = vrot.slane %v391_v47, %v2906_v40  ;;  %v642_v50 = vsel %vm623_vm2, %v613_v36, 0.0 }
 0x1e2   :  { %696 = vrot.lane.b32.xlu0 %v2883_v9, %s2494_s1 }
 0x1e3   :  { %v3011_v48 = vcombine.high %v2992_v4, %v2491_v0 }
 0x1e4   :  { %902 = vrot.lane.b32.xlu1 %v2794_v56, %s2496_s21  ;;  %v374_v56 = vrot.slane %v360_v28, %v2686_v57 }
 0x1e5   :  { %v616_v47 = vmul.f32 %v2823_v60, %v3011_v48 }
 0x1e6   :  { %796 = vrot.lane.b32.xlu0 %v2868_v37, %s2495_s3 }
 0x1e8   :  { %906 = vrot.lane.b32.xlu1 %v2809_v30, %s2496_s21  ;;  %v639_v30 = vsel %vm623_vm2, %v612_v20, 0.0 }
 0x1ea   :  { %804 = vrot.lane.b32.xlu0 %v2875_v1, %s2495_s3 }
 0x1ec   :  { %914 = vrot.lane.b32.xlu1 %v2823_v60, %s2496_s21 }
 0x1ee   :  { %808 = vrot.lane.b32.xlu0 %v2883_v9, %s2495_s3 }
 0x1f2   :  { %908 = vrot.lane.b32.xlu0 %v2868_v37, %s2496_s21  ;;  %v615_v37 = vmul.f32 %v2736_v15, %v2992_v4 }
 0x1f6   :  { %916 = vrot.lane.b32.xlu0 %v2875_v1, %s2496_s21 }
 0x1fa   :  { %920 = vrot.lane.b32.xlu0 %v2883_v9, %s2496_s21 }
 0x210   :  { %637 = vadd.xlane.f32.xlu1 %v636_v54  ;;  %v390_v54 = vrot.slane %v376_v42, %v2686_v57  ;;  %v645_v42 = vsel %vm623_vm2, %v614_v12, 0.0 }
 0x212   :  { %v408_v25 = vcombine.high %v374_v56, %v390_v54 }
 0x214   :  { %v3035_v28 = vrot.slane %v408_v25, %v2906_v40 }
 0x219   :  { %625 = vadd.xlane.f32.xlu0 %v624_v46  ;;  %v3005_v46 = vrot.slane %v392_v61, %v2906_v40  ;;  %v651_v61 = vsel %vm623_vm2, %v616_v47, 0.0 }
 0x21b   :  { %v617_v15 = vmul.f32 %v2875_v1, %v3005_v46 }
 0x21d   :  { %631 = vadd.xlane.f32.xlu0 %v630_v10  ;;  %v407_v10 = vcombine.low %v374_v56, %v390_v54  ;;  %v648_v56 = vsel %vm623_vm2, %v615_v37, 0.0  ;;  %v654_v12 = vsel %vm623_vm2, %v617_v15, 0.0 }
 0x21f   :  { %v3020_v2 = vrot.slane %v407_v10, %v2906_v40 }
 0x221   :  { %686 = vrot.lane.b32.xlu1 %v2752_v27, %s2494_s1  ;;  %v619_v25 = vmul.f32 %v2883_v9, %v3020_v2 }
 0x225   :  { %694 = vrot.lane.b32.xlu1 %v2755_v13, %s2494_s1 }
 0x226   :  { %v2958_v6 = vpop.permute.xlu1 %672 }
 0x228   :  { %v3022_v18 = vpop.permute.xlu0 %674 }
 0x229   :  { %698 = vrot.lane.b32.xlu1 %v2767_v38, %s2494_s1 }
 0x22a   :  { %v2960_v14 = vpop.permute.xlu1 %784 }
 0x22c   :  { %v3044_v20 = vpop.permute.xlu0 %680 }
 0x22d   :  { %798 = vrot.lane.b32.xlu1 %v2752_v27, %s2495_s3 }
 0x22e   :  { %v2962_v31 = vpop.permute.xlu1 %896 }
 0x231   :  { %806 = vrot.lane.b32.xlu1 %v2755_v13, %s2495_s3 }
 0x232   :  { %v2971_v39 = vpop.permute.xlu1 %676 }
 0x233   :  { %700 = vrot.lane.b32.xlu0 %v2800_v59, %s2494_s1  ;;  %v722_v15 = vmul.f32 %v2971_v39, %v2926_v35 }
 0x235   :  { %810 = vrot.lane.b32.xlu1 %v2767_v38, %s2495_s3 }
 0x236   :  { %v2994_v5 = vpop.permute.xlu1 %788 }
 0x237   :  { %812 = vrot.lane.b32.xlu0 %v2800_v59, %s2495_s3 }
 0x239   :  { %910 = vrot.lane.b32.xlu1 %v2752_v27, %s2496_s21  ;;  %v3029_v27 = vcombine.high %v3005_v46, %v2491_v0 }
 0x23a   :  { %v901_v3 = vpop.permute.xlu1 %900 }
 0x23b   :  { %924 = vrot.lane.b32.xlu0 %v2800_v59, %s2496_s21  ;;  %v618_v60 = vmul.f32 %v2755_v13, %v3029_v27 }
 0x23d   :  { %918 = vrot.lane.b32.xlu1 %v2755_v13, %s2496_s21  ;;  %v657_v55 = vsel %vm623_vm2, %v618_v60, 0.0  ;;  %v3054_v13 = vcombine.high %v3035_v28, %v2491_v0  ;;  %v944_v60 = vmul.f32 %v2962_v31, %v2923_v63  ;;  %v946_v31 = vmul.f32 %v901_v3, %v2926_v35 }
 0x23e   :  { %v679_v54 = vpop.permute.xlu1 %678 }
 0x23f   :  { %v622_v36 = vmul.f32 %v2814_v16, %v3054_v13 }
 0x241   :  { %922 = vrot.lane.b32.xlu1 %v2767_v38, %s2496_s21  ;;  %v669_v47 = vsel %vm623_vm2, %v622_v36, 0.0  ;;  %v723_v36 = vmul.f32 %v679_v54, %v2968_v41 }
 0x243   :  { %v745_v3 = vsel %vm623_vm2, %v723_v36, 0.0 }
 0x25a   :  { %634 = vadd.xlane.f32.xlu0 %v633_v8  ;;  %v3042_v8 = vcombine.high %v3020_v2, %v2491_v0  ;;  %v720_v0 = vmul.f32 %v2958_v6, %v2923_v63 }
 0x25c   :  { %v620_v10 = vmul.f32 %v2767_v38, %v3042_v8  ;;  %v660_v38 = vsel %vm623_vm2, %v619_v25, 0.0  ;;  %v736_v37 = vsel %vm623_vm2, %v720_v0, 0.0  ;;  %v742_v25 = vsel %vm623_vm2, %v722_v15, 0.0 }
 0x25e   :  { %640 = vadd.xlane.f32.xlu0 %v639_v30  ;;  %v683_v30 = vpop.permute.xlu1 %682  ;;  %v663_v1 = vsel %vm623_vm2, %v620_v10, 0.0  ;;  %v960_v10 = vsel %vm623_vm2, %v944_v60, 0.0 }
 0x262   :  { %646 = vadd.xlane.f32.xlu0 %v645_v42  ;;  %v691_v42 = vpop.permute.xlu1 %690 }
 0x265   :  { %628 = vadd.xlane.f32.xlu1 %v627_v33  ;;  %v3059_v33 = vpop.permute.xlu0 %688 }
 0x266   :  { %652 = vadd.xlane.f32.xlu0 %v651_v61  ;;  %v791_v61 = vpop.permute.xlu1 %790 }
 0x267   :  { %v835_v60 = vmul.f32 %v791_v61, %v2968_v41 }
 0x269   :  { %643 = vadd.xlane.f32.xlu1 %v642_v50  ;;  %v3068_v9 = vpop.permute.xlu0 %786  ;;  %v832_v50 = vmul.f32 %v2960_v14, %v2923_v63 }
 0x26a   :  { %658 = vadd.xlane.f32.xlu0 %v657_v55  ;;  %v795_v55 = vpop.permute.xlu1 %794 }
 0x26b   :  { %v848_v6 = vsel %vm623_vm2, %v832_v50, 0.0  ;;  %v729_v50 = vmul.f32 %v691_v42, %v3011_v48 }
 0x26d   :  { %649 = vadd.xlane.f32.xlu1 %v648_v56  ;;  %v3075_v56 = vpop.permute.xlu0 %792 }
 0x26e   :  { %664 = vadd.xlane.f32.xlu0 %v663_v1  ;;  %v803_v63 = vpop.permute.xlu1 %802 }
 0x271   :  { %655 = vadd.xlane.f32.xlu1 %v654_v12  ;;  %v3081_v14 = vpop.permute.xlu0 %800  ;;  %v834_v12 = vmul.f32 %v2994_v5, %v2926_v35  ;;  %v725_v35 = vmul.f32 %v683_v30, %v2981_v49  ;;  %v837_v30 = vmul.f32 %v795_v55, %v2981_v49 }
 0x272   :  { %670 = vadd.xlane.f32.xlu0 %v669_v47  ;;  %v903_v5 = vpop.permute.xlu1 %902 }
 0x273   :  { %v854_v39 = vsel %vm623_vm2, %v834_v12, 0.0  ;;  %v751_v54 = vsel %vm623_vm2, %v725_v35, 0.0 }
 0x275   :  { %661 = vadd.xlane.f32.xlu1 %v660_v38  ;;  %v3089_v1 = vpop.permute.xlu0 %898  ;;  %v966_v38 = vsel %vm623_vm2, %v946_v31, 0.0  ;;  %v863_v31 = vsel %vm623_vm2, %v837_v30, 0.0 }
 0x276   :  { %737 = vadd.xlane.f32.xlu0 %v736_v37  ;;  %v907_v47 = vpop.permute.xlu1 %906 }
 0x277   :  { %v949_v35 = vmul.f32 %v907_v47, %v2981_v49 }
 0x279   :  { %v3098_v0 = vpop.permute.xlu0 %904 }
 0x27a   :  { %849 = vadd.xlane.f32.xlu0 %v848_v6  ;;  %v915_v6 = vpop.permute.xlu1 %914 }
 0x27d   :  { %v3103_v37 = vpop.permute.xlu0 %912 }
 0x27e   :  { %961 = vadd.xlane.f32.xlu0 %v960_v10  ;;  %v857_v10 = vsel %vm623_vm2, %v835_v60, 0.0  ;;  %v975_v60 = vsel %vm623_vm2, %v949_v35, 0.0  ;;  %v833_v35 = vmul.f32 %v3068_v9, %v2989_v62  ;;  %v840_v9 = vmul.f32 %v3081_v14, %v2992_v4 }
 0x281   :  { %v3108_v15 = vpop.permute.xlu0 %684 }
 0x282   :  { %743 = vadd.xlane.f32.xlu0 %v742_v25  ;;  %v841_v25 = vmul.f32 %v803_v63, %v3011_v48  ;;  %v953_v63 = vmul.f32 %v915_v6, %v3011_v48  ;;  %v724_v48 = vmul.f32 %v3044_v20, %v2911_v43 }
 0x284   :  { %v875_v36 = vsel %vm623_vm2, %v841_v25, 0.0  ;;  %v987_v47 = vsel %vm623_vm2, %v953_v63, 0.0  ;;  %v748_v20 = vsel %vm623_vm2, %v724_v48, 0.0 }
 0x285   :  { %v3114_v42 = vpop.permute.xlu0 %692 }
 0x286   :  { %702 = vrot.lane.b32.xlu1 %v2814_v16, %s2494_s1  ;;  %855 = vadd.xlane.f32.xlu0 %v854_v39  ;;  %v947_v39 = vmul.f32 %v903_v5, %v2968_v41  ;;  %v621_v41 = vmul.f32 %v2800_v59, %v3035_v28 }
 0x288   :  { %v666_v30 = vsel %vm623_vm2, %v621_v41, 0.0 }
 0x289   :  { %v3120_v55 = vpop.permute.xlu0 %696 }
 0x28a   :  { %814 = vrot.lane.b32.xlu1 %v2814_v16, %s2495_s3  ;;  %967 = vadd.xlane.f32.xlu0 %v966_v38 }
 0x28e   :  { %926 = vrot.lane.b32.xlu1 %v2814_v16, %s2496_s21  ;;  %746 = vadd.xlane.f32.xlu0 %v745_v3  ;;  %v763_v16 = vsel %vm623_vm2, %v729_v50, 0.0  ;;  %v969_v3 = vsel %vm623_vm2, %v947_v39, 0.0 }
 0x292   :  { %752 = vadd.xlane.f32.xlu0 %v751_v54  ;;  %v3124_v54 = vpop.permute.xlu0 %796 }
 0x296   :  { %764 = vadd.xlane.f32.xlu0 %v763_v16  ;;  %v721_v16 = vmul.f32 %v3022_v18, %v2989_v62 }
 0x298   :  { %v739_v25 = vsel %vm623_vm2, %v721_v16, 0.0 }
 0x29a   :  { %858 = vadd.xlane.f32.xlu0 %v857_v10  ;;  %v3135_v10 = vpop.permute.xlu0 %804 }
 0x29d   :  { %v3112_v12 = vpop.xlane.xlu1 %637 }
 0x29e   :  { %864 = vadd.xlane.f32.xlu0 %v863_v31  ;;  %v728_v31 = vmul.f32 %v3059_v33, %v2992_v4 }
 0x2a0   :  { %v760_v33 = vsel %vm623_vm2, %v728_v31, 0.0  ;;  %v872_v31 = vsel %vm623_vm2, %v840_v9, 0.0 }
 0x2a1   :  { %v687_v61 = vpop.permute.xlu1 %686 }
 0x2a2   :  { %876 = vadd.xlane.f32.xlu0 %v875_v36  ;;  %v727_v49 = vmul.f32 %v687_v61, %v3001_v23  ;;  %v3144_v61 = vpop.permute.xlu0 %808 }
 0x2a4   :  { %v757_v6 = vsel %vm623_vm2, %v727_v49, 0.0  ;;  %v851_v49 = vsel %vm623_vm2, %v833_v35, 0.0 }
 0x2a5   :  { %v695_v38 = vpop.permute.xlu1 %694 }
 0x2a6   :  { %970 = vadd.xlane.f32.xlu0 %v969_v3  ;;  %v731_v59 = vmul.f32 %v695_v38, %v3029_v27 }
 0x2a8   :  { %v769_v36 = vsel %vm623_vm2, %v731_v59, 0.0 }
 0x2a9   :  { %v699_v50 = vpop.permute.xlu1 %698 }
 0x2aa   :  { %976 = vadd.xlane.f32.xlu0 %v975_v60  ;;  %v733_v39 = vmul.f32 %v699_v50, %v3042_v8  ;;  %v909_v60 = vpop.permute.xlu0 %908  ;;  %v836_v50 = vmul.f32 %v3075_v56, %v2911_v43 }
 0x2ac   :  { %v775_v63 = vsel %vm623_vm2, %v733_v39, 0.0  ;;  %v860_v59 = vsel %vm623_vm2, %v836_v50, 0.0  ;;  %v948_v39 = vmul.f32 %v3098_v0, %v2911_v43  ;;  %v732_v50 = vmul.f32 %v3120_v55, %v3020_v2 }
 0x2ad   :  { %v799_v5 = vpop.permute.xlu1 %798  ;;  %v844_v55 = vmul.f32 %v3144_v61, %v3020_v2 }
 0x2ae   :  { %988 = vadd.xlane.f32.xlu0 %v987_v47  ;;  %v839_v3 = vmul.f32 %v799_v5, %v3001_v23  ;;  %v917_v5 = vpop.permute.xlu0 %916  ;;  %v972_v43 = vsel %vm623_vm2, %v948_v39, 0.0 }
 0x2b0   :  { %v869_v16 = vsel %vm623_vm2, %v839_v3, 0.0 }
 0x2b1   :  { %v807_v18 = vpop.permute.xlu1 %806 }
 0x2b2   :  { %667 = vadd.xlane.f32.xlu1 %v666_v30  ;;  %758 = vadd.xlane.f32.xlu0 %v757_v6  ;;  %v843_v41 = vmul.f32 %v807_v18, %v3029_v27  ;;  %v945_v6 = vmul.f32 %v3089_v1, %v2989_v62  ;;  %v921_v14 = vpop.permute.xlu0 %920 }
 0x2b4   :  { %v881_v48 = vsel %vm623_vm2, %v843_v41, 0.0  ;;  %v838_v41 = vmul.f32 %v3124_v54, %v2977_v45  ;;  %v950_v54 = vmul.f32 %v909_v60, %v2977_v45 }
 0x2b5   :  { %v811_v38 = vpop.permute.xlu1 %810 }
 0x2b6   :  { %740 = vadd.xlane.f32.xlu1 %v739_v25  ;;  %770 = vadd.xlane.f32.xlu0 %v769_v36  ;;  %v845_v30 = vmul.f32 %v811_v38, %v3042_v8  ;;  %v963_v38 = vsel %vm623_vm2, %v945_v6, 0.0  ;;  %v3174_v62 = vpop.xlane.xlu0 %625  ;;  %v978_v6 = vsel %vm623_vm2, %v950_v54, 0.0 }
 0x2b8   :  { %v887_v18 = vsel %vm623_vm2, %v845_v30, 0.0 }
 0x2b9   :  { %v911_v47 = vpop.permute.xlu1 %910 }
 0x2ba   :  { %749 = vadd.xlane.f32.xlu1 %v748_v20  ;;  %776 = vadd.xlane.f32.xlu0 %v775_v63  ;;  %v951_v25 = vmul.f32 %v911_v47, %v3001_v23  ;;  %v952_v23 = vmul.f32 %v3103_v37, %v2992_v4  ;;  %v3183_v0 = vpop.xlane.xlu0 %631  ;;  %v730_v4 = vmul.f32 %v3114_v42, %v3005_v46  ;;  %v866_v47 = vsel %vm623_vm2, %v838_v41, 0.0 }
 0x2bb   :  { %v842_v42 = vmul.f32 %v3135_v10, %v3005_v46  ;;  %v954_v10 = vmul.f32 %v917_v5, %v3005_v46 }
 0x2bc   :  { %v981_v20 = vsel %vm623_vm2, %v951_v25, 0.0 }
 0x2bd   :  { %v919_v56 = vpop.permute.xlu1 %918  ;;  %v878_v30 = vsel %vm623_vm2, %v842_v42, 0.0 }
 0x2be   :  { %761 = vadd.xlane.f32.xlu1 %v760_v33  ;;  %870 = vadd.xlane.f32.xlu0 %v869_v16  ;;  %v955_v36 = vmul.f32 %v919_v56, %v3029_v27  ;;  %v726_v27 = vmul.f32 %v3108_v15, %v2977_v45  ;;  %v984_v33 = vsel %vm623_vm2, %v952_v23, 0.0  ;;  %v701_v37 = vpop.permute.xlu0 %700  ;;  %v766_v15 = vsel %vm623_vm2, %v730_v4, 0.0 }
 0x2bf   :  { %v734_v39 = vmul.f32 %v701_v37, %v3035_v28 }
 0x2c0   :  { %v993_v3 = vsel %vm623_vm2, %v955_v36, 0.0 }
 0x2c1   :  { %v923_v35 = vpop.permute.xlu1 %922 }
 0x2c2   :  { %852 = vadd.xlane.f32.xlu1 %v851_v49  ;;  %882 = vadd.xlane.f32.xlu0 %v881_v48  ;;  %v957_v1 = vmul.f32 %v923_v35, %v3042_v8  ;;  %v754_v8 = vsel %vm623_vm2, %v726_v27, 0.0  ;;  %v813_v16 = vpop.permute.xlu0 %812  ;;  %v772_v49 = vsel %vm623_vm2, %v732_v50, 0.0 }
 0x2c4   :  { %v999_v63 = vsel %vm623_vm2, %v957_v1, 0.0 }
 0x2c6   :  { %861 = vadd.xlane.f32.xlu1 %v860_v59  ;;  %888 = vadd.xlane.f32.xlu0 %v887_v18  ;;  %v925_v9 = vpop.permute.xlu0 %924  ;;  %v884_v59 = vsel %vm623_vm2, %v844_v55, 0.0  ;;  %v956_v18 = vmul.f32 %v921_v14, %v3020_v2  ;;  %v778_v2 = vsel %vm623_vm2, %v734_v39, 0.0 }
 0x2c7   :  { %v958_v35 = vmul.f32 %v925_v9, %v3035_v28 }
 0x2c8   :  { %v996_v46 = vsel %vm623_vm2, %v956_v18, 0.0 }
 0x2ca   :  { %873 = vadd.xlane.f32.xlu1 %v872_v31  ;;  %982 = vadd.xlane.f32.xlu0 %v981_v20  ;;  %v990_v31 = vsel %vm623_vm2, %v954_v10, 0.0  ;;  %v846_v20 = vmul.f32 %v813_v16, %v3035_v28 }
 0x2cc   :  { %v890_v23 = vsel %vm623_vm2, %v846_v20, 0.0 }
 0x2ce   :  { %964 = vadd.xlane.f32.xlu1 %v963_v38  ;;  %994 = vadd.xlane.f32.xlu0 %v993_v3 }
 0x2d2   :  { %973 = vadd.xlane.f32.xlu1 %v972_v43  ;;  %1000 = vadd.xlane.f32.xlu0 %v999_v63  ;;  %v1002_v43 = vsel %vm623_vm2, %v958_v35, 0.0 }
 0x2d6   :  { %985 = vadd.xlane.f32.xlu1 %v984_v33 }
 0x2da   :  { %755 = vadd.xlane.f32.xlu1 %v754_v8 }
 0x2de   :  { %767 = vadd.xlane.f32.xlu1 %v766_v15 }
 0x2e2   :  { %773 = vadd.xlane.f32.xlu1 %v772_v49 }
 0x2e6   :  { %867 = vadd.xlane.f32.xlu1 %v866_v47 }
 0x2e7   :  { %v3202_v48 = vpop.xlane.xlu0 %634 }
 0x2ea   :  { %879 = vadd.xlane.f32.xlu1 %v878_v30 }
 0x2eb   :  { %v3206_v56 = vpop.xlane.xlu0 %640 }
 0x2ee   :  { %885 = vadd.xlane.f32.xlu1 %v884_v59 }
 0x2ef   :  { %v3212_v61 = vpop.xlane.xlu0 %646 }
 0x2f2   :  { %979 = vadd.xlane.f32.xlu1 %v978_v6  ;;  %v3210_v25 = vpop.xlane.xlu1 %628 }
 0x2f3   :  { %v3218_v60 = vpop.xlane.xlu0 %652 }
 0x2f6   :  { %991 = vadd.xlane.f32.xlu1 %v990_v31  ;;  %v3216_v45 = vpop.xlane.xlu1 %643 }
 0x2f7   :  { %v3224_v36 = vpop.xlane.xlu0 %658 }
 0x2fa   :  { %997 = vadd.xlane.f32.xlu1 %v996_v46  ;;  %v3222_v5 = vpop.xlane.xlu1 %649 }
 0x2fb   :  { %v3230_v38 = vpop.xlane.xlu0 %664 }
 0x2fe   :  { %779 = vadd.xlane.f32.xlu1 %v778_v2  ;;  %v3228_v14 = vpop.xlane.xlu1 %655 }
 0x2ff   :  { %v3236_v3 = vpop.xlane.xlu0 %670 }
 0x302   :  { %891 = vadd.xlane.f32.xlu1 %v890_v23  ;;  %v3234_v1 = vpop.xlane.xlu1 %661 }
 0x303   :  { %v738_v63 = vpop.xlane.xlu0 %737 }
 0x304   :  { %v1009_v15 = vsel %vm1008_vm3, %v3174_v62, %v738_v63 }
 0x306   :  { %1003 = vadd.xlane.f32.xlu1 %v1002_v43  ;;  %v703_v27 = vpop.permute.xlu1 %702 }
 0x307   :  { %v735_v33 = vmul.f32 %v703_v27, %v3054_v13  ;;  %v850_v28 = vpop.xlane.xlu0 %849 }
 0x308   :  { %v1026_v16 = vsel %vm1025_vm4, %v1009_v15, %v850_v28 }
 0x309   :  { %v781_v4 = vsel %vm623_vm2, %v735_v33, 0.0 }
 0x30a   :  { %782 = vadd.xlane.f32.xlu0 %v781_v4  ;;  %v815_v8 = vpop.permute.xlu1 %814 }
 0x30b   :  { %v847_v37 = vmul.f32 %v815_v8, %v3054_v13  ;;  %v962_v49 = vpop.xlane.xlu0 %961 }
 0x30c   :  { %v3248_v47 = vsel %vm1042_vm5, %v1026_v16, %v962_v49 }
 0x30d   :  { %v893_v50 = vsel %vm623_vm2, %v847_v37, 0.0  ;;  %v1060_v9 = vsel %vm1059_vm6, %v3248_v47, -inf }
 0x30e   :  { %894 = vadd.xlane.f32.xlu0 %v893_v50  ;;  %v927_v41 = vpop.permute.xlu1 %926  ;;  %1061 = vmax.xlane.f32.xlu1 %v1060_v9 }
 0x30f   :  { %v959_v42 = vmul.f32 %v927_v41, %v3054_v13  ;;  %v744_v30 = vpop.xlane.xlu0 %743 }
 0x310   :  { %v1011_v54 = vsel %vm1008_vm3, %v3183_v0, %v744_v30 }
 0x311   :  { %v1005_v55 = vsel %vm623_vm2, %v959_v42, 0.0 }
 0x312   :  { %1006 = vadd.xlane.f32.xlu0 %v1005_v55 }
 0x313   :  { %v856_v62 = vpop.xlane.xlu0 %855 }
 0x314   :  { %v1028_v59 = vsel %vm1025_vm4, %v1011_v54, %v856_v62 }
 0x317   :  { %v968_v10 = vpop.xlane.xlu0 %967 }
 0x318   :  { %v3257_v13 = vsel %vm1042_vm5, %v1028_v59, %v968_v10 }
 0x319   :  { %v1066_v6 = vsel %vm1059_vm6, %v3257_v13, -inf }
 0x31a   :  { %1067 = vmax.xlane.f32.xlu1 %v1066_v6 }
 0x31b   :  { %v747_v18 = vpop.xlane.xlu0 %746 }
 0x31c   :  { %v1012_v55 = vsel %vm1008_vm3, %v3202_v48, %v747_v18 }
 0x31f   :  { %v753_v31 = vpop.xlane.xlu0 %752 }
 0x320   :  { %v1014_v48 = vsel %vm1008_vm3, %v3206_v56, %v753_v31 }
 0x323   :  { %v765_v39 = vpop.xlane.xlu0 %764 }
 0x327   :  { %v859_v46 = vpop.xlane.xlu0 %858 }
 0x328   :  { %v1029_v62 = vsel %vm1025_vm4, %v1012_v55, %v859_v46 }
 0x32b   :  { %v865_v20 = vpop.xlane.xlu0 %864 }
 0x32c   :  { %v1031_v46 = vsel %vm1025_vm4, %v1014_v48, %v865_v20  ;;  %v1018_v20 = vsel %vm1008_vm3, %v3218_v60, %v765_v39 }
 0x32f   :  { %v877_v2 = vpop.xlane.xlu0 %876 }
 0x333   :  { %v971_v35 = vpop.xlane.xlu0 %970 }
 0x334   :  { %v3275_v10 = vsel %vm1042_vm5, %v1029_v62, %v971_v35 }
 0x337   :  { %v977_v23 = vpop.xlane.xlu0 %976 }
 0x33b   :  { %v989_v43 = vpop.xlane.xlu0 %988 }
 0x33f   :  { %v3261_v0 = vpop.xlane.xlu1 %667  ;;  %v759_v27 = vpop.xlane.xlu0 %758 }
 0x340   :  { %v1016_v60 = vsel %vm1008_vm3, %v3212_v61, %v759_v27 }
 0x343   :  { %v741_v63 = vpop.xlane.xlu1 %740  ;;  %v771_v33 = vpop.xlane.xlu0 %770 }
 0x344   :  { %v1010_v49 = vsel %vm1008_vm3, %v3210_v25, %v741_v63 }
 0x347   :  { %v750_v4 = vpop.xlane.xlu1 %749  ;;  %v777_v8 = vpop.xlane.xlu0 %776 }
 0x348   :  { %v1013_v25 = vsel %vm1008_vm3, %v3112_v12, %v750_v4  ;;  %v3291_v12 = vsel %vm1042_vm5, %v1031_v46, %v977_v23 }
 0x349   :  { %v1075_v23 = vsel %vm1059_vm6, %v3291_v12, -inf }
 0x34b   :  { %v762_v28 = vpop.xlane.xlu1 %761  ;;  %v871_v50 = vpop.xlane.xlu0 %870 }
 0x34c   :  { %v1017_v4 = vsel %vm1008_vm3, %v3222_v5, %v762_v28  ;;  %v1033_v39 = vsel %vm1025_vm4, %v1016_v60, %v871_v50 }
 0x34f   :  { %v853_v37 = vpop.xlane.xlu1 %852  ;;  %v883_v41 = vpop.xlane.xlu0 %882 }
 0x350   :  { %v1027_v42 = vsel %vm1025_vm4, %v1010_v49, %v853_v37  ;;  %v1069_v37 = vsel %vm1059_vm6, %v3275_v10, -inf }
 0x353   :  { %v862_v15 = vpop.xlane.xlu1 %861  ;;  %v889_v54 = vpop.xlane.xlu0 %888 }
 0x354   :  { %v1030_v6 = vsel %vm1025_vm4, %v1013_v25, %v862_v15 }
 0x357   :  { %v874_v16 = vpop.xlane.xlu1 %873  ;;  %v983_v56 = vpop.xlane.xlu0 %982 }
 0x358   :  { %v1034_v31 = vsel %vm1025_vm4, %v1017_v4, %v874_v16  ;;  %v3315_v55 = vsel %vm1042_vm5, %v1033_v39, %v983_v56 }
 0x359   :  { %v1081_v25 = vsel %vm1059_vm6, %v3315_v55, -inf }
 0x35b   :  { %v965_v9 = vpop.xlane.xlu1 %964 }
 0x35c   :  { %v3269_v30 = vsel %vm1042_vm5, %v1027_v42, %v965_v9  ;;  %v1035_v42 = vsel %vm1025_vm4, %v1018_v20, %v877_v2  ;;  %v995_v9 = vpop.xlane.xlu0 %994 }
 0x35d   :  { %v1063_v59 = vsel %vm1059_vm6, %v3269_v30, -inf  ;;  %v3307_v28 = vsel %vm1042_vm5, %v1035_v42, %v989_v43  ;;  %v1020_v43 = vsel %vm1008_vm3, %v3224_v36, %v771_v33 }
 0x35e   :  { %1064 = vmax.xlane.f32.xlu0 %v1063_v59  ;;  %v1087_v2 = vsel %vm1059_vm6, %v3307_v28, -inf  ;;  %v1037_v59 = vsel %vm1025_vm4, %v1020_v43, %v883_v41 }
 0x35f   :  { %v974_v63 = vpop.xlane.xlu1 %973  ;;  %v3323_v61 = vsel %vm1042_vm5, %v1037_v59, %v995_v9 }
 0x360   :  { %v3283_v18 = vsel %vm1042_vm5, %v1030_v6, %v974_v63  ;;  %v1001_v27 = vpop.xlane.xlu0 %1000  ;;  %v1022_v6 = vsel %vm1008_vm3, %v3230_v38, %v777_v8  ;;  %v1093_v48 = vsel %vm1059_vm6, %v3323_v61, -inf }
 0x361   :  { %v1072_v35 = vsel %vm1059_vm6, %v3283_v18, -inf  ;;  %v1039_v63 = vsel %vm1025_vm4, %v1022_v6, %v889_v54 }
 0x362   :  { %1070 = vmax.xlane.f32.xlu0 %v1069_v37  ;;  %1073 = vmax.xlane.f32.xlu1 %v1072_v35  ;;  %v3331_v36 = vsel %vm1042_vm5, %v1039_v63, %v1001_v27 }
 0x363   :  { %v986_v15 = vpop.xlane.xlu1 %985  ;;  %v1099_v41 = vsel %vm1059_vm6, %v3331_v36, -inf }
 0x364   :  { %v3299_v49 = vsel %vm1042_vm5, %v1034_v31, %v986_v15 }
 0x365   :  { %v1084_v5 = vsel %vm1059_vm6, %v3299_v49, -inf }
 0x366   :  { %1076 = vmax.xlane.f32.xlu0 %v1075_v23  ;;  %1085 = vmax.xlane.f32.xlu1 %v1084_v5 }
 0x367   :  { %v756_v16 = vpop.xlane.xlu1 %755 }
 0x368   :  { %v1015_v35 = vsel %vm1008_vm3, %v3216_v45, %v756_v16 }
 0x36a   :  { %1088 = vmax.xlane.f32.xlu0 %v1087_v2 }
 0x36b   :  { %v768_v62 = vpop.xlane.xlu1 %767 }
 0x36c   :  { %v1019_v56 = vsel %vm1008_vm3, %v3228_v14, %v768_v62 }
 0x36e   :  { %1082 = vmax.xlane.f32.xlu0 %v1081_v25 }
 0x36f   :  { %v774_v50 = vpop.xlane.xlu1 %773 }
 0x370   :  { %v1021_v42 = vsel %vm1008_vm3, %v3234_v1, %v774_v50 }
 0x372   :  { %1094 = vmax.xlane.f32.xlu0 %v1093_v48 }
 0x373   :  { %v868_v33 = vpop.xlane.xlu1 %867 }
 0x374   :  { %v1032_v38 = vsel %vm1025_vm4, %v1015_v35, %v868_v33 }
 0x376   :  { %1100 = vmax.xlane.f32.xlu0 %v1099_v41 }
 0x377   :  { %v880_v46 = vpop.xlane.xlu1 %879 }
 0x378   :  { %v1036_v31 = vsel %vm1025_vm4, %v1019_v56, %v880_v46  ;;  %v2501_v56 = vmov 1  }
 0x379   :  { %2247 = vset.pattern.permute.xlu0 %v2501_v56 }
 0x37b   :  { %v886_v37 = vpop.xlane.xlu1 %885 }
 0x37c   :  { %v1038_v23 = vsel %vm1025_vm4, %v1021_v42, %v886_v37 }
 0x37f   :  { %v980_v8 = vpop.xlane.xlu1 %979 }
 0x380   :  { %v3339_v54 = vsel %vm1042_vm5, %v1032_v38, %v980_v8 }
 0x381   :  { %v1078_v4 = vsel %vm1059_vm6, %v3339_v54, -inf }
 0x382   :  { %1079 = vmax.xlane.f32.xlu1 %v1078_v4  ;;  %v2500_v4 = vmov 0  }
 0x383   :  { %v992_v15 = vpop.xlane.xlu1 %991  ;;  %2246 = vset.pattern.permute.xlu1 %v2500_v4 }
 0x384   :  { %v3347_v20 = vsel %vm1042_vm5, %v1036_v31, %v992_v15 }
 0x385   :  { %v1090_v45 = vsel %vm1059_vm6, %v3347_v20, -inf }
 0x386   :  { %1091 = vmax.xlane.f32.xlu1 %v1090_v45 }
 0x387   :  { %v998_v5 = vpop.xlane.xlu1 %997 }
 0x388   :  { %v3355_v16 = vsel %vm1042_vm5, %v1038_v23, %v998_v5 }
 0x389   :  { %v1096_v14 = vsel %vm1059_vm6, %v3355_v16, -inf }
 0x38a   :  { %1097 = vmax.xlane.f32.xlu1 %v1096_v14 }
 0x38b   :  { %v780_v60 = vpop.xlane.xlu1 %779 }
 0x38c   :  { %v1023_v9 = vsel %vm1008_vm3, %v3261_v0, %v780_v60 }
 0x38f   :  { %v892_v39 = vpop.xlane.xlu1 %891 }
 0x390   :  { %v1040_v2 = vsel %vm1025_vm4, %v1023_v9, %v892_v39 }
 0x393   :  { %v1004_v62 = vpop.xlane.xlu1 %1003 }
 0x394   :  { %v3363_v1 = vsel %vm1042_vm5, %v1040_v2, %v1004_v62 }
 0x395   :  { %v1102_v43 = vsel %vm1059_vm6, %v3363_v1, -inf }
 0x396   :  { %1103 = vmax.xlane.f32.xlu1 %v1102_v43 }
 0x397   :  { %v783_v59 = vpop.xlane.xlu0 %782 }
 0x398   :  { %v1024_v27 = vsel %vm1008_vm3, %v3236_v3, %v783_v59 }
 0x39b   :  { %v895_v25 = vpop.xlane.xlu0 %894  ;;  %v1062_v6 = vpop.xlane.xlu1 %1061 }
 0x39c   :  { %v1041_v50 = vsel %vm1025_vm4, %v1024_v27, %v895_v25  ;;  %v1108_v0 = vsub.f32 %v3248_v47, %v1062_v6 }
 0x39e   :  { %v1124_v41 = vmul.f32 1.442695, %v1108_v0 }
 0x39f   :  { %v1007_v63 = vpop.xlane.xlu0 %1006 }
 0x3a0   :  { %v3372_v48 = vsel %vm1042_vm5, %v1041_v50, %v1007_v63  ;;  %2278 = vpow2.f32 %v1124_v41 }
 0x3a1   :  { %v1105_v33 = vsel %vm1059_vm6, %v3372_v48, -inf }
 0x3a2   :  { %1106 = vmax.xlane.f32.xlu0 %v1105_v33 }
 0x3a7   :  { %v1068_v46 = vpop.xlane.xlu1 %1067 }
 0x3a8   :  { %v1110_v37 = vsub.f32 %v3257_v13, %v1068_v46 }
 0x3aa   :  { %v3377_v35 = vpop.eup %2278  ;;  %v1128_v3 = vmul.f32 1.442695, %v1110_v37 }
 0x3ab   :  { %v1156_v38 = vsel %vm1059_vm6, %v3377_v35, 0.0 }
 0x3ac   :  { %2280 = vpow2.f32 %v1128_v3  ;;  %1157 = vadd.xlane.f32.xlu1 %v1156_v38 }
 0x3b6   :  { %v3381_v47 = vpop.eup %2280 }
 0x3b7   :  { %v1162_v8 = vsel %vm1059_vm6, %v3381_v47, 0.0 }
 0x3b8   :  { %1163 = vadd.xlane.f32.xlu1 %v1162_v8 }
 0x3eb   :  { %v1065_v13 = vpop.xlane.xlu0 %1064 }
 0x3ec   :  { %v1109_v31 = vsub.f32 %v3269_v30, %v1065_v13 }
 0x3ee   :  { %v1126_v15 = vmul.f32 1.442695, %v1109_v31 }
 0x3ef   :  { %v1071_v45 = vpop.xlane.xlu0 %1070  ;;  %v1074_v42 = vpop.xlane.xlu1 %1073 }
 0x3f0   :  { %2282 = vpow2.f32 %v1126_v15  ;;  %v1111_v23 = vsub.f32 %v3275_v10, %v1071_v45  ;;  %v1112_v5 = vsub.f32 %v3283_v18, %v1074_v42 }
 0x3f2   :  { %v1130_v14 = vmul.f32 1.442695, %v1111_v23  ;;  %v1132_v60 = vmul.f32 1.442695, %v1112_v5 }
 0x3f3   :  { %v1077_v39 = vpop.xlane.xlu0 %1076  ;;  %v1086_v9 = vpop.xlane.xlu1 %1085 }
 0x3f4   :  { %2284 = vpow2.f32 %v1130_v14  ;;  %v1113_v2 = vsub.f32 %v3291_v12, %v1077_v39  ;;  %v1116_v62 = vsub.f32 %v3299_v49, %v1086_v9 }
 0x3f5   :  { %2286 = vpow2.f32 %v1132_v60 }
 0x3f6   :  { %v1134_v43 = vmul.f32 1.442695, %v1113_v2  ;;  %v1140_v30 = vmul.f32 1.442695, %v1116_v62 }
 0x3f7   :  { %v1089_v59 = vpop.xlane.xlu0 %1088 }
 0x3f8   :  { %2288 = vpow2.f32 %v1134_v43  ;;  %v1117_v25 = vsub.f32 %v3307_v28, %v1089_v59 }
 0x3f9   :  { %2290 = vpow2.f32 %v1140_v30 }
 0x3fa   :  { %v3393_v10 = vpop.eup %2282  ;;  %v1142_v18 = vmul.f32 1.442695, %v1117_v25 }
 0x3fb   :  { %v1083_v27 = vpop.xlane.xlu0 %1082  ;;  %v1159_v50 = vsel %vm1059_vm6, %v3393_v10, 0.0 }
 0x3fc   :  { %2292 = vpow2.f32 %v1142_v18  ;;  %v1115_v12 = vsub.f32 %v3315_v55, %v1083_v27  ;;  %1160 = vadd.xlane.f32.xlu0 %v1159_v50 }
 0x3fe   :  { %v3398_v49 = vpop.eup %2284  ;;  %v1138_v6 = vmul.f32 1.442695, %v1115_v12 }
 0x3ff   :  { %v3400_v63 = vpop.eup %2286  ;;  %v1095_v0 = vpop.xlane.xlu0 %1094  ;;  %v1165_v28 = vsel %vm1059_vm6, %v3398_v49, 0.0 }
 0x400   :  { %2294 = vpow2.f32 %v1138_v6  ;;  %v1119_v33 = vsub.f32 %v3323_v61, %v1095_v0  ;;  %1166 = vadd.xlane.f32.xlu0 %v1165_v28  ;;  %v1168_v41 = vsel %vm1059_vm6, %v3400_v63, 0.0 }
 0x401   :  { %1169 = vadd.xlane.f32.xlu1 %v1168_v41 }
 0x402   :  { %v3407_v46 = vpop.eup %2288  ;;  %v1146_v55 = vmul.f32 1.442695, %v1119_v33 }
 0x403   :  { %v3409_v37 = vpop.eup %2290  ;;  %v1101_v3 = vpop.xlane.xlu0 %1100  ;;  %v1171_v38 = vsel %vm1059_vm6, %v3407_v46, 0.0 }
 0x404   :  { %2296 = vpow2.f32 %v1146_v55  ;;  %v1121_v8 = vsub.f32 %v3331_v36, %v1101_v3  ;;  %1172 = vadd.xlane.f32.xlu0 %v1171_v38  ;;  %v1180_v61 = vsel %vm1059_vm6, %v3409_v37, 0.0 }
 0x405   :  { %1181 = vadd.xlane.f32.xlu1 %v1180_v61 }
 0x406   :  { %v3416_v13 = vpop.eup %2292  ;;  %v1150_v31 = vmul.f32 1.442695, %v1121_v8 }
 0x407   :  { %v1183_v15 = vsel %vm1059_vm6, %v3416_v13, 0.0 }
 0x408   :  { %2298 = vpow2.f32 %v1150_v31  ;;  %1184 = vadd.xlane.f32.xlu0 %v1183_v15  ;;  %v2502_v15 = vmov 2  }
 0x40a   :  { %v3420_v45 = vpop.eup %2294 }
 0x40b   :  { %v1177_v42 = vsel %vm1059_vm6, %v3420_v45, 0.0 }
 0x40c   :  { %1178 = vadd.xlane.f32.xlu0 %v1177_v42 }
 0x40e   :  { %v3424_v36 = vpop.eup %2296 }
 0x40f   :  { %v1080_v23 = vpop.xlane.xlu1 %1079  ;;  %v1189_v5 = vsel %vm1059_vm6, %v3424_v36, 0.0 }
 0x410   :  { %v1114_v14 = vsub.f32 %v3339_v54, %v1080_v23  ;;  %1190 = vadd.xlane.f32.xlu0 %v1189_v5  ;;  %v2503_v5 = vmov 3  }
 0x412   :  { %v3429_v60 = vpop.eup %2298  ;;  %v1136_v39 = vmul.f32 1.442695, %v1114_v14 }
 0x413   :  { %v1092_v9 = vpop.xlane.xlu1 %1091  ;;  %v1195_v2 = vsel %vm1059_vm6, %v3429_v60, 0.0 }
 0x414   :  { %2300 = vpow2.f32 %v1136_v39  ;;  %v1118_v62 = vsub.f32 %v3347_v20, %v1092_v9  ;;  %1196 = vadd.xlane.f32.xlu0 %v1195_v2 }
 0x416   :  { %v1144_v43 = vmul.f32 1.442695, %v1118_v62 }
 0x417   :  { %v1098_v30 = vpop.xlane.xlu1 %1097 }
 0x418   :  { %2302 = vpow2.f32 %v1144_v43  ;;  %v1120_v59 = vsub.f32 %v3355_v16, %v1098_v30 }
 0x41a   :  { %v1148_v25 = vmul.f32 1.442695, %v1120_v59 }
 0x41c   :  { %2304 = vpow2.f32 %v1148_v25 }
 0x41e   :  { %v3435_v54 = vpop.eup %2300 }
 0x41f   :  { %v1174_v18 = vsel %vm1059_vm6, %v3435_v54, 0.0 }
 0x420   :  { %1175 = vadd.xlane.f32.xlu1 %v1174_v18 }
 0x422   :  { %v3439_v27 = vpop.eup %2302 }
 0x423   :  { %v1104_v50 = vpop.xlane.xlu1 %1103  ;;  %v1186_v20 = vsel %vm1059_vm6, %v3439_v27, 0.0 }
 0x424   :  { %v1122_v12 = vsub.f32 %v3363_v1, %v1104_v50  ;;  %1187 = vadd.xlane.f32.xlu1 %v1186_v20 }
 0x426   :  { %v3444_v6 = vpop.eup %2304  ;;  %v1152_v16 = vmul.f32 1.442695, %v1122_v12 }
 0x427   :  { %v1192_v0 = vsel %vm1059_vm6, %v3444_v6, 0.0 }
 0x428   :  { %2306 = vpow2.f32 %v1152_v16  ;;  %1193 = vadd.xlane.f32.xlu1 %v1192_v0 }
 0x42f   :  { %v1107_v28 = vpop.xlane.xlu0 %1106 }
 0x430   :  { %v1123_v33 = vsub.f32 %v3372_v48, %v1107_v28 }
 0x432   :  { %v3449_v41 = vpop.eup %2306  ;;  %v1154_v55 = vmul.f32 1.442695, %v1123_v33 }
 0x433   :  { %v1198_v3 = vsel %vm1059_vm6, %v3449_v41, 0.0 }
 0x434   :  { %2308 = vpow2.f32 %v1154_v55  ;;  %1199 = vadd.xlane.f32.xlu1 %v1198_v3 }
 0x439   :  { %v1158_v1 = vpop.xlane.xlu1 %1157 }
 0x43a   :  { %2310 = vrcp.f32 %v1158_v1 }
 0x43e   :  { %v3453_v38 = vpop.eup %2308 }
 0x43f   :  { %v1201_v8 = vsel %vm1059_vm6, %v3453_v38, 0.0 }
 0x440   :  { %1202 = vadd.xlane.f32.xlu0 %v1201_v8 }
 0x444   :  { %v2311_v61 = vpop.eup %2310 }
 0x445   :  { %v1164_v31 = vpop.xlane.xlu1 %1163  ;;  %v1220_v48 = vmul.f32 %v2311_v61, %v3377_v35 }
 0x446   :  { %2312 = vrcp.f32 %v1164_v31 }
 0x447   :  { %1338 = vperm.xlu1 %2246, %v1220_v48  }
 0x44b   :  { %2248 = vset.pattern.permute.xlu1 %v2502_v15 }
 0x44c   :  { %1673 = vperm.xlu1 %2248, %v1220_v48  }
 0x450   :  { %v2313_v42 = vpop.eup %2312  ;;  %2251 = vset.pattern.permute.xlu1 %v2500_v4 }
 0x451   :  { %v1222_v23 = vmul.f32 %v2313_v42, %v3381_v47 }
 0x453   :  { %1348 = vperm.xlu1 %2251, %v1222_v23  }
 0x456   :  { %1513 = vperm.xlu0 %2247, %v1220_v48  }
 0x45a   :  { %2249 = vset.pattern.permute.xlu0 %v2503_v5 }
 0x45b   :  { %1833 = vperm.xlu0 %2249, %v1220_v48  }
 0x45f   :  { %2250 = vset.pattern.permute.xlu0 %v2500_v4 }
 0x489   :  { %v1161_v35 = vpop.xlane.xlu0 %1160 }
 0x48a   :  { %2314 = vrcp.f32 %v1161_v35 }
 0x48d   :  { %v1167_v59 = vpop.xlane.xlu0 %1166 }
 0x48e   :  { %v1170_v14 = vpop.xlane.xlu1 %1169 }
 0x48f   :  { %2316 = vrcp.f32 %v1170_v14 }
 0x492   :  { %v1182_v39 = vpop.xlane.xlu1 %1181 }
 0x493   :  { %2318 = vrcp.f32 %v1182_v39 }
 0x494   :  { %v2315_v9 = vpop.eup %2314 }
 0x495   :  { %v1221_v2 = vmul.f32 %v2315_v9, %v3393_v10 }
 0x497   :  { %1343 = vperm.xlu0 %2250, %v1221_v2  }
 0x499   :  { %v2317_v62 = vpop.eup %2316 }
 0x49a   :  { %v1224_v47 = vmul.f32 %v2317_v62, %v3400_v63 }
 0x49b   :  { %2253 = vset.pattern.permute.xlu0 %v2502_v15 }
 0x49c   :  { %1358 = vperm.xlu1 %2251, %v1224_v47   ;;  %1677 = vperm.xlu0 %2253, %v1221_v2  }
 0x49d   :  { %v2319_v43 = vpop.eup %2318 }
 0x49e   :  { %v1228_v30 = vmul.f32 %v2319_v43, %v3409_v37  ;;  %v1173_v37 = vpop.xlane.xlu0 %1172 }
 0x4a0   :  { %1378 = vperm.xlu1 %2251, %v1228_v30   ;;  %1689 = vperm.xlu0 %2253, %v1224_v47  }
 0x4a2   :  { %v1185_v20 = vpop.xlane.xlu0 %1184 }
 0x4a4   :  { %2252 = vset.pattern.permute.xlu1 %v2501_v56  ;;  %1705 = vperm.xlu0 %2253, %v1228_v30  }
 0x4a5   :  { %1517 = vperm.xlu1 %2252, %v1221_v2  }
 0x4a8   :  { %2257 = vset.pattern.permute.xlu0 %v2500_v4 }
 0x4a9   :  { %1521 = vperm.xlu1 %2252, %v1222_v23  }
 0x4ad   :  { %1529 = vperm.xlu1 %2252, %v1224_v47   ;;  %v1176_v10 = vpop.xlane.xlu1 %1175 }
 0x4b1   :  { %1545 = vperm.xlu1 %2252, %v1228_v30   ;;  %v1188_v63 = vpop.xlane.xlu1 %1187 }
 0x4b2   :  { %2320 = vrcp.f32 %v1188_v63 }
 0x4b5   :  { %2254 = vset.pattern.permute.xlu1 %v2502_v15  ;;  %v1194_v25 = vpop.xlane.xlu1 %1193 }
 0x4b6   :  { %1681 = vperm.xlu1 %2254, %v1222_v23   ;;  %2322 = vrcp.f32 %v1194_v25 }
 0x4b7   :  { %2324 = vrcp.f32 %v1167_v59 }
 0x4b8   :  { %2326 = vrcp.f32 %v1173_v37 }
 0x4b9   :  { %2328 = vrcp.f32 %v1185_v20 }
 0x4ba   :  { %2255 = vset.pattern.permute.xlu1 %v2503_v5  ;;  %2330 = vrcp.f32 %v1176_v10 }
 0x4bb   :  { %1837 = vperm.xlu1 %2255, %v1221_v2  }
 0x4bc   :  { %v2321_v18 = vpop.eup %2320 }
 0x4bd   :  { %v3472_v50 = vmul.f32 %v2321_v18, %v3439_v27 }
 0x4bf   :  { %1841 = vperm.xlu1 %2255, %v1222_v23   ;;  %1388 = vperm.xlu0 %2257, %v3472_v50  }
 0x4c0   :  { %v2323_v12 = vpop.eup %2322 }
 0x4c1   :  { %v1232_v16 = vmul.f32 %v2323_v12, %v3444_v6  ;;  %v2325_v0 = vpop.eup %2324 }
 0x4c2   :  { %v1223_v28 = vmul.f32 %v2325_v0, %v3398_v49  ;;  %v2327_v33 = vpop.eup %2326  ;;  %v1200_v49 = vpop.xlane.xlu1 %1199 }
 0x4c3   :  { %1849 = vperm.xlu1 %2255, %v1224_v47   ;;  %1398 = vperm.xlu0 %2257, %v1232_v16   ;;  %v1225_v27 = vmul.f32 %v2327_v33, %v3407_v46  ;;  %v2329_v55 = vpop.eup %2328  ;;  %v1179_v46 = vpop.xlane.xlu0 %1178  ;;  %2332 = vrcp.f32 %v1200_v49 }
 0x4c4   :  { %v1229_v6 = vmul.f32 %v2329_v55, %v3416_v13  ;;  %v2331_v3 = vpop.eup %2330  ;;  %2334 = vrcp.f32 %v1179_v46 }
 0x4c5   :  { %v1226_v1 = vmul.f32 %v2331_v3, %v3435_v54 }
 0x4c7   :  { %1865 = vperm.xlu1 %2255, %v1228_v30   ;;  %2258 = vset.pattern.permute.xlu0 %v2501_v56  ;;  %v1191_v13 = vpop.xlane.xlu0 %1190 }
 0x4c8   :  { %1525 = vperm.xlu0 %2258, %v1223_v28   ;;  %2336 = vrcp.f32 %v1191_v13 }
 0x4cb   :  { %2256 = vset.pattern.permute.xlu1 %v2500_v4  ;;  %v1197_v8 = vpop.xlane.xlu0 %1196 }
 0x4cc   :  { %1353 = vperm.xlu1 %2256, %v1223_v28   ;;  %1533 = vperm.xlu0 %2258, %v1225_v27   ;;  %2338 = vrcp.f32 %v1197_v8 }
 0x4cd   :  { %v2333_v54 = vpop.eup %2332 }
 0x4ce   :  { %v1234_v61 = vmul.f32 %v2333_v54, %v3449_v41  ;;  %v2335_v31 = vpop.eup %2334 }
 0x4cf   :  { %v1227_v48 = vmul.f32 %v2335_v31, %v3420_v45  ;;  %v1203_v45 = vpop.xlane.xlu0 %1202 }
 0x4d0   :  { %1363 = vperm.xlu1 %2256, %v1225_v27   ;;  %1549 = vperm.xlu0 %2258, %v1229_v6   ;;  %2340 = vrcp.f32 %v1203_v45 }
 0x4d2   :  { %v2337_v42 = vpop.eup %2336 }
 0x4d3   :  { %v1231_v23 = vmul.f32 %v2337_v42, %v3424_v36  ;;  %v3499_v36 = vpop.permute.xlu1 %1338 }
 0x4d4   :  { %1368 = vperm.xlu1 %2256, %v1226_v1   ;;  %2261 = vset.pattern.permute.xlu0 %v2502_v15 }
 0x4d5   :  { %1697 = vperm.xlu0 %2261, %v1226_v1   ;;  %v1514_v9 = vpop.permute.xlu0 %1513 }
 0x4d6   :  { %v2339_v35 = vpop.eup %2338 }
 0x4d7   :  { %v1233_v41 = vmul.f32 %v2339_v35, %v3429_v60  ;;  %v1674_v39 = vpop.permute.xlu1 %1673 }
 0x4d8   :  { %1383 = vperm.xlu1 %2256, %v1229_v6   ;;  %v1736_v18 = vmul.f32 %v1674_v39, %v2774_v44 }
 0x4d9   :  { %1713 = vperm.xlu0 %2261, %v3472_v50  }
 0x4da   :  { %v2341_v60 = vpop.eup %2340  ;;  %v1834_v47 = vpop.permute.xlu0 %1833 }
 0x4db   :  { %v1235_v14 = vmul.f32 %v2341_v60, %v3453_v38  ;;  %v3505_v2 = vpop.permute.xlu1 %1348  ;;  %v1896_v20 = vmul.f32 %v1834_v47, %v2774_v44 }
 0x4dc   :  { %2259 = vset.pattern.permute.xlu1 %v2501_v56 }
 0x4dd   :  { %1537 = vperm.xlu1 %2259, %v1226_v1   ;;  %1721 = vperm.xlu0 %2261, %v1232_v16  }
 0x4e1   :  { %1553 = vperm.xlu1 %2259, %v3472_v50   ;;  %2262 = vset.pattern.permute.xlu0 %v2503_v5 }
 0x4e2   :  { %1845 = vperm.xlu0 %2262, %v1223_v28  }
 0x4e5   :  { %1561 = vperm.xlu1 %2259, %v1232_v16  }
 0x4e6   :  { %1853 = vperm.xlu0 %2262, %v1225_v27  }
 0x4e9   :  { %2260 = vset.pattern.permute.xlu1 %v2502_v15 }
 0x4ea   :  { %1685 = vperm.xlu1 %2260, %v1223_v28   ;;  %1869 = vperm.xlu0 %2262, %v1229_v6  }
 0x4ee   :  { %1693 = vperm.xlu1 %2260, %v1225_v27   ;;  %2265 = vset.pattern.permute.xlu0 %v2500_v4 }
 0x4ef   :  { %1408 = vperm.xlu0 %2265, %v1234_v61  }
 0x4f2   :  { %1709 = vperm.xlu1 %2260, %v1229_v6  }
 0x4f3   :  { %2266 = vset.pattern.permute.xlu0 %v2501_v56 }
 0x4f4   :  { %1541 = vperm.xlu0 %2266, %v1227_v48  }
 0x4f6   :  { %2263 = vset.pattern.permute.xlu1 %v2503_v5 }
 0x4f7   :  { %1857 = vperm.xlu1 %2263, %v1226_v1  }
 0x4f8   :  { %1557 = vperm.xlu0 %2266, %v1231_v23  }
 0x4fb   :  { %1873 = vperm.xlu1 %2263, %v3472_v50  }
 0x4fc   :  { %1565 = vperm.xlu0 %2266, %v1233_v41  }
 0x4ff   :  { %1881 = vperm.xlu1 %2263, %v1232_v16  }
 0x500   :  { %2269 = vset.pattern.permute.xlu0 %v2502_v15 }
 0x501   :  { %1729 = vperm.xlu0 %2269, %v1234_v61  }
 0x503   :  { %2264 = vset.pattern.permute.xlu1 %v2500_v4 }
 0x504   :  { %1373 = vperm.xlu1 %2264, %v1227_v48  }
 0x505   :  { %2270 = vset.pattern.permute.xlu0 %v2503_v5 }
 0x506   :  { %1861 = vperm.xlu0 %2270, %v1227_v48  }
 0x508   :  { %1393 = vperm.xlu1 %2264, %v1231_v23  }
 0x50a   :  { %1877 = vperm.xlu0 %2270, %v1231_v23  }
 0x50c   :  { %1403 = vperm.xlu1 %2264, %v1233_v41  }
 0x50e   :  { %1885 = vperm.xlu0 %2270, %v1233_v41  }
 0x510   :  { %2267 = vset.pattern.permute.xlu1 %v2501_v56 }
 0x511   :  { %1569 = vperm.xlu1 %2267, %v1234_v61  }
 0x512   :  { %2273 = vset.pattern.permute.xlu0 %v2501_v56 }
 0x513   :  { %1573 = vperm.xlu0 %2273, %v1235_v14  }
 0x515   :  { %2268 = vset.pattern.permute.xlu1 %v2502_v15 }
 0x516   :  { %1701 = vperm.xlu1 %2268, %v1227_v48   ;;  %v3512_v38 = vpop.permute.xlu0 %1343 }
 0x517   :  { %2275 = vset.pattern.permute.xlu0 %v2503_v5 }
 0x518   :  { %1893 = vperm.xlu0 %2275, %v1235_v14  }
 0x51a   :  { %1717 = vperm.xlu1 %2268, %v1231_v23  }
 0x51b   :  { %v3508_v62 = vpop.permute.xlu1 %1358  ;;  %v1678_v10 = vpop.permute.xlu0 %1677 }
 0x51c   :  { %v1737_v59 = vmul.f32 %v1678_v10, %v2782_v51 }
 0x51e   :  { %1725 = vperm.xlu1 %2268, %v1233_v41  }
 0x51f   :  { %v3510_v43 = vpop.permute.xlu1 %1378 }
 0x522   :  { %2271 = vset.pattern.permute.xlu1 %v2503_v5  ;;  %v1576_v5 = vmul.f32 %v1514_v9, %v2774_v44 }
 0x523   :  { %1889 = vperm.xlu1 %2271, %v1234_v61  }
 0x524   :  { %v1518_v56 = vpop.permute.xlu1 %1517 }
 0x525   :  { %v1577_v30 = vmul.f32 %v1518_v56, %v2782_v51 }
 0x527   :  { %2272 = vset.pattern.permute.xlu1 %v2500_v4  ;;  %1610 = vrot.lane.b32.xlu0 %v1577_v30, %s2494_s1  ;;  %v1690_v4 = vpop.permute.xlu0 %1689 }
 0x528   :  { %1413 = vperm.xlu1 %2272, %v1235_v14   ;;  %v1522_v63 = vpop.permute.xlu1 %1521  ;;  %v1740_v61 = vmul.f32 %v1690_v4, %v2788_v53 }
 0x52b   :  { %1770 = vrot.lane.b32.xlu0 %v1737_v59, %s2495_s3  ;;  %v1706_v12 = vpop.permute.xlu0 %1705 }
 0x52c   :  { %2274 = vset.pattern.permute.xlu1 %v2502_v15  ;;  %v1530_v25 = vpop.permute.xlu1 %1529  ;;  %v1578_v15 = vmul.f32 %v1522_v63, %v2785_v52  ;;  %v1744_v23 = vmul.f32 %v1706_v12, %v2797_v58 }
 0x52d   :  { %1733 = vperm.xlu1 %2274, %v1235_v14   ;;  %v1580_v27 = vmul.f32 %v1530_v25, %v2788_v53 }
 0x530   :  { %v1546_v37 = vpop.permute.xlu1 %1545 }
 0x531   :  { %1608 = vrot.lane.b32.xlu1 %v1576_v5, %s2494_s1  ;;  %v1584_v1 = vmul.f32 %v1546_v37, %v2797_v58 }
 0x535   :  { %v1682_v50 = vpop.permute.xlu1 %1681  ;;  %1768 = vrot.lane.b32.xlu1 %v1736_v18, %s2495_s3 }
 0x536   :  { %v1738_v13 = vmul.f32 %v1682_v50, %v2785_v52 }
 0x539   :  { %1928 = vrot.lane.b32.xlu1 %v1896_v20, %s2496_s21 }
 0x53a   :  { %v1838_v16 = vpop.permute.xlu1 %1837 }
 0x53b   :  { %v1897_v0 = vmul.f32 %v1838_v16, %v2782_v51 }
 0x53d   :  { %1612 = vrot.lane.b32.xlu1 %v1578_v15, %s2494_s1  ;;  %1930 = vrot.lane.b32.xlu0 %v1897_v0, %s2496_s21 }
 0x53e   :  { %v1842_v28 = vpop.permute.xlu1 %1841  ;;  %v1389_v33 = vpop.permute.xlu0 %1388 }
 0x53f   :  { %v3533_v55 = vmul.f32 %v2817_v17, %v1389_v33  ;;  %v1898_v14 = vmul.f32 %v1842_v28, %v2785_v52 }
 0x541   :  { %1616 = vrot.lane.b32.xlu1 %v1580_v27, %s2494_s1 }
 0x542   :  { %v1850_v6 = vpop.permute.xlu1 %1849  ;;  %v1399_v3 = vpop.permute.xlu0 %1398 }
 0x543   :  { %v3538_v49 = vmul.f32 %v2826_v11, %v1399_v3  ;;  %v1900_v56 = vmul.f32 %v1850_v6, %v2788_v53 }
 0x545   :  { %1624 = vrot.lane.b32.xlu1 %v1584_v1, %s2494_s1 }
 0x546   :  { %v1866_v46 = vpop.permute.xlu1 %1865 }
 0x547   :  { %v1526_v54 = vpop.permute.xlu0 %1525  ;;  %v1904_v59 = vmul.f32 %v1866_v46, %v2797_v58 }
 0x548   :  { %v1579_v8 = vmul.f32 %v1526_v54, %v2829_v19 }
 0x549   :  { %1772 = vrot.lane.b32.xlu1 %v1738_v13, %s2495_s3 }
 0x54a   :  { %1614 = vrot.lane.b32.xlu0 %v1579_v8, %s2494_s1 }
 0x54b   :  { %v3546_v31 = vpop.permute.xlu1 %1353  ;;  %v1534_v48 = vpop.permute.xlu0 %1533 }
 0x54c   :  { %v1581_v42 = vmul.f32 %v1534_v48, %v2832_v21 }
 0x54d   :  { %1776 = vrot.lane.b32.xlu1 %v1740_v61, %s2495_s3 }
 0x54e   :  { %1618 = vrot.lane.b32.xlu0 %v1581_v42, %s2494_s1 }
 0x54f   :  { %v1364_v35 = vpop.permute.xlu1 %1363  ;;  %v1550_v41 = vpop.permute.xlu0 %1549 }
 0x550   :  { %v3553_v45 = vmul.f32 %v2832_v21, %v1364_v35  ;;  %v1585_v60 = vmul.f32 %v1550_v41, %v2837_v22 }
 0x551   :  { %1784 = vrot.lane.b32.xlu1 %v1744_v23, %s2495_s3 }
 0x552   :  { %1626 = vrot.lane.b32.xlu0 %v1585_v60, %s2494_s1 }
 0x553   :  { %v1369_v39 = vpop.permute.xlu1 %1368 }
 0x554   :  { %v3560_v9 = vmul.f32 %v2840_v24, %v1369_v39  ;;  %v1698_v47 = vpop.permute.xlu0 %1697 }
 0x555   :  { %1932 = vrot.lane.b32.xlu1 %v1898_v14, %s2496_s21  ;;  %v1742_v33 = vmul.f32 %v1698_v47, %v2840_v24 }
 0x557   :  { %v1384_v30 = vpop.permute.xlu1 %1383 }
 0x558   :  { %v3565_v10 = vmul.f32 %v2837_v22, %v1384_v30  ;;  %v1714_v63 = vpop.permute.xlu0 %1713 }
 0x559   :  { %1936 = vrot.lane.b32.xlu1 %v1900_v56, %s2496_s21  ;;  %v1746_v1 = vmul.f32 %v1714_v63, %v2817_v17 }
 0x55c   :  { %v1538_v25 = vpop.permute.xlu1 %1537  ;;  %v1722_v5 = vpop.permute.xlu0 %1721 }
 0x55d   :  { %1944 = vrot.lane.b32.xlu1 %v1904_v59, %s2496_s21  ;;  %v1582_v37 = vmul.f32 %v1538_v25, %v2840_v24  ;;  %v1748_v8 = vmul.f32 %v1722_v5, %v2826_v11 }
 0x560   :  { %v1554_v18 = vpop.permute.xlu1 %1553 }
 0x561   :  { %1620 = vrot.lane.b32.xlu1 %v1582_v37, %s2494_s1  ;;  %v1846_v4 = vpop.permute.xlu0 %1845  ;;  %v1586_v50 = vmul.f32 %v1554_v18, %v2817_v17 }
 0x562   :  { %v1899_v48 = vmul.f32 %v1846_v4, %v2829_v19 }
 0x564   :  { %v1562_v20 = vpop.permute.xlu1 %1561 }
 0x565   :  { %1628 = vrot.lane.b32.xlu1 %v1586_v50, %s2494_s1  ;;  %v1854_v12 = vpop.permute.xlu0 %1853  ;;  %v1588_v16 = vmul.f32 %v1562_v20, %v2826_v11 }
 0x566   :  { %v1901_v41 = vmul.f32 %v1854_v12, %v2832_v21 }
 0x569   :  { %v1686_v15 = vpop.permute.xlu1 %1685  ;;  %1632 = vrot.lane.b32.xlu1 %v1588_v16, %s2494_s1  ;;  %v1870_v0 = vpop.permute.xlu0 %1869 }
 0x56a   :  { %v1739_v28 = vmul.f32 %v1686_v15, %v2829_v19  ;;  %v1905_v47 = vmul.f32 %v1870_v0, %v2837_v22 }
 0x56c   :  { %1774 = vrot.lane.b32.xlu0 %v1739_v28, %s2495_s3 }
 0x56d   :  { %v1694_v27 = vpop.permute.xlu1 %1693  ;;  %1780 = vrot.lane.b32.xlu1 %v1742_v33, %s2495_s3 }
 0x56e   :  { %v1741_v6 = vmul.f32 %v1694_v27, %v2832_v21  ;;  %v1409_v3 = vpop.permute.xlu0 %1408 }
 0x56f   :  { %v3583_v46 = vmul.f32 %v2843_v7, %v1409_v3 }
 0x570   :  { %1778 = vrot.lane.b32.xlu0 %v1741_v6, %s2495_s3  ;;  %v1497_v6 = vmul.f32 %v2782_v51, %v3512_v38 }
 0x571   :  { %v1710_v13 = vpop.permute.xlu1 %1709  ;;  %1788 = vrot.lane.b32.xlu1 %v1746_v1, %s2495_s3 }
 0x572   :  { %v1745_v54 = vmul.f32 %v1710_v13, %v2837_v22 }
 0x573   :  { %v1542_v61 = vpop.permute.xlu0 %1541 }
 0x574   :  { %1786 = vrot.lane.b32.xlu0 %v1745_v54, %s2495_s3  ;;  %v1583_v21 = vmul.f32 %v1542_v61, %v2854_v32 }
 0x575   :  { %1792 = vrot.lane.b32.xlu1 %v1748_v8, %s2495_s3 }
 0x576   :  { %v1858_v42 = vpop.permute.xlu1 %1857 }
 0x577   :  { %v1902_v23 = vmul.f32 %v1858_v42, %v2840_v24  ;;  %v1558_v35 = vpop.permute.xlu0 %1557 }
 0x578   :  { %1934 = vrot.lane.b32.xlu0 %v1899_v48, %s2496_s21  ;;  %v1587_v25 = vmul.f32 %v1558_v35, %v2846_v26 }
 0x579   :  { %1940 = vrot.lane.b32.xlu1 %v1902_v23, %s2496_s21 }
 0x57a   :  { %v1874_v60 = vpop.permute.xlu1 %1873 }
 0x57b   :  { %v1906_v14 = vmul.f32 %v1874_v60, %v2817_v17  ;;  %v1566_v39 = vpop.permute.xlu0 %1565 }
 0x57c   :  { %1938 = vrot.lane.b32.xlu0 %v1901_v41, %s2496_s21  ;;  %v1589_v37 = vmul.f32 %v1566_v39, %v2849_v29 }
 0x57d   :  { %1948 = vrot.lane.b32.xlu1 %v1906_v14, %s2496_s21 }
 0x57e   :  { %v1882_v56 = vpop.permute.xlu1 %1881 }
 0x57f   :  { %v1908_v24 = vmul.f32 %v1882_v56, %v2826_v11 }
 0x580   :  { %1946 = vrot.lane.b32.xlu0 %v1905_v47, %s2496_s21  ;;  %v1730_v30 = vpop.permute.xlu0 %1729 }
 0x581   :  { %1952 = vrot.lane.b32.xlu1 %v1908_v24, %s2496_s21  ;;  %v1750_v15 = vmul.f32 %v1730_v30, %v2843_v7 }
 0x583   :  { %v1374_v63 = vpop.permute.xlu1 %1373 }
 0x584   :  { %v3605_v17 = vmul.f32 %v2854_v32, %v1374_v63  ;;  %1622 = vrot.lane.b32.xlu0 %v1583_v21, %s2494_s1 }
 0x585   :  { %v1862_v59 = vpop.permute.xlu0 %1861 }
 0x586   :  { %v1903_v42 = vmul.f32 %v1862_v59, %v2854_v32 }
 0x587   :  { %v1394_v22 = vpop.permute.xlu1 %1393 }
 0x588   :  { %v3610_v5 = vmul.f32 %v2846_v26, %v1394_v22  ;;  %1630 = vrot.lane.b32.xlu0 %v1587_v25, %s2494_s1 }
 0x589   :  { %v1878_v11 = vpop.permute.xlu0 %1877 }
 0x58a   :  { %v1907_v51 = vmul.f32 %v1878_v11, %v2846_v26  ;;  %v1504_v11 = vmul.f32 %v2797_v58, %v3510_v43  ;;  %v1499_v43 = vmul.f32 %v2829_v19, %v3546_v31  ;;  %v1500_v19 = vmul.f32 %v2788_v53, %v3508_v62 }
 0x58b   :  { %v1404_v18 = vpop.permute.xlu1 %1403 }
 0x58c   :  { %v3615_v4 = vmul.f32 %v2849_v29, %v1404_v18  ;;  %1634 = vrot.lane.b32.xlu0 %v1589_v37, %s2494_s1 }
 0x58d   :  { %v1886_v50 = vpop.permute.xlu0 %1885 }
 0x58e   :  { %v1909_v60 = vmul.f32 %v1886_v50, %v2849_v29 }
 0x590   :  { %v1570_v20 = vpop.permute.xlu1 %1569 }
 0x591   :  { %v1590_v12 = vmul.f32 %v1570_v20, %v2843_v7 }
 0x592   :  { %v1574_v16 = vpop.permute.xlu0 %1573 }
 0x593   :  { %1636 = vrot.lane.b32.xlu1 %v1590_v12, %s2494_s1 }
 0x595   :  { %v1702_v0 = vpop.permute.xlu1 %1701 }
 0x596   :  { %v1743_v28 = vmul.f32 %v1702_v0, %v2854_v32  ;;  %v1591_v32 = vmul.f32 %v1574_v16, %v2861_v34 }
 0x597   :  { %1796 = vrot.lane.b32.xlu1 %v1750_v15, %s2495_s3  ;;  %v1894_v33 = vpop.permute.xlu0 %1893 }
 0x598   :  { %1782 = vrot.lane.b32.xlu0 %v1743_v28, %s2495_s3  ;;  %v1911_v21 = vmul.f32 %v1894_v33, %v2861_v34 }
 0x599   :  { %v1718_v27 = vpop.permute.xlu1 %1717 }
 0x59a   :  { %v1747_v3 = vmul.f32 %v1718_v27, %v2846_v26 }
 0x59b   :  { %v1611_v1 = vpop.permute.xlu0 %1610 }
 0x59c   :  { %v1657_v13 = vadd.f32 %v1611_v1, %v1497_v6  ;;  %1790 = vrot.lane.b32.xlu0 %v1747_v3, %s2495_s3  ;;  %v1498_v6 = vmul.f32 %v2785_v52, %v3505_v2 }
 0x59d   :  { %v1726_v54 = vpop.permute.xlu1 %1725 }
 0x59e   :  { %v1749_v8 = vmul.f32 %v1726_v54, %v2849_v29 }
 0x59f   :  { %v1771_v61 = vpop.permute.xlu0 %1770 }
 0x5a0   :  { %v1817_v48 = vadd.f32 %v1771_v61, %v1657_v13  ;;  %1794 = vrot.lane.b32.xlu0 %v1749_v8, %s2495_s3 }
 0x5a2   :  { %v1890_v23 = vpop.permute.xlu1 %1889 }
 0x5a3   :  { %v1910_v35 = vmul.f32 %v1890_v23, %v2843_v7  ;;  %v1496_v7 = vmul.f32 %v2774_v44, %v3499_v36 }
 0x5a4   :  { %1942 = vrot.lane.b32.xlu0 %v1903_v42, %s2496_s21 }
 0x5a5   :  { %1956 = vrot.lane.b32.xlu1 %v1910_v35, %s2496_s21 }
 0x5a7   :  { %v1414_v38 = vpop.permute.xlu1 %1413 }
 0x5a8   :  { %v3636_v41 = vmul.f32 %v2861_v34, %v1414_v38  ;;  %1950 = vrot.lane.b32.xlu0 %v1907_v51, %s2496_s21 }
 0x5ac   :  { %v1734_v14 = vpop.permute.xlu1 %1733  ;;  %1954 = vrot.lane.b32.xlu0 %v1909_v60, %s2496_s21 }
 0x5ad   :  { %v1751_v24 = vmul.f32 %v1734_v14, %v2861_v34 }
 0x5af   :  { %v1931_v39 = vpop.permute.xlu0 %1930 }
 0x5b0   :  { %v1977_v47 = vadd.f32 %v1931_v39, %v1817_v48  ;;  %v1609_v56 = vpop.permute.xlu1 %1608  ;;  %1638 = vrot.lane.b32.xlu0 %v1591_v32, %s2494_s1 }
 0x5b1   :  { %v1656_v26 = vadd.f32 %v1609_v56, %v1496_v7 }
 0x5b4   :  { %v1769_v30 = vpop.permute.xlu1 %1768  ;;  %1798 = vrot.lane.b32.xlu0 %v1751_v24, %s2495_s3 }
 0x5b5   :  { %v1816_v29 = vadd.f32 %v1769_v30, %v1656_v26 }
 0x5b8   :  { %v1929_v63 = vpop.permute.xlu1 %1928  ;;  %1958 = vrot.lane.b32.xlu0 %v1911_v21, %s2496_s21 }
 0x5b9   :  { %v1976_v59 = vadd.f32 %v1929_v63, %v1816_v29 }
 0x5bc   :  { %v1613_v25 = vpop.permute.xlu1 %1612  ;;  %v1615_v44 = vpop.permute.xlu0 %1614 }
 0x5bd   :  { %v1658_v1 = vadd.f32 %v1613_v25, %v1498_v6  ;;  %v1659_v54 = vadd.f32 %v1615_v44, %v1499_v43 }
 0x5c0   :  { %v1617_v36 = vpop.permute.xlu1 %1616  ;;  %v1619_v22 = vpop.permute.xlu0 %1618 }
 0x5c1   :  { %v1660_v56 = vadd.f32 %v1617_v36, %v1500_v19 }
 0x5c4   :  { %v1625_v37 = vpop.permute.xlu1 %1624  ;;  %v1627_v18 = vpop.permute.xlu0 %1626 }
 0x5c5   :  { %v1664_v50 = vadd.f32 %v1625_v37, %v1504_v11  ;;  %v3652_v20 = vadd.f32 %v1627_v18, %v3565_v10 }
 0x5c8   :  { %v1773_v12 = vpop.permute.xlu1 %1772 }
 0x5c9   :  { %v1818_v13 = vadd.f32 %v1773_v12, %v1658_v1 }
 0x5cc   :  { %v1777_v16 = vpop.permute.xlu1 %1776 }
 0x5cd   :  { %v1820_v24 = vadd.f32 %v1777_v16, %v1660_v56 }
 0x5d0   :  { %v1785_v34 = vpop.permute.xlu1 %1784 }
 0x5d1   :  { %v1824_v25 = vadd.f32 %v1785_v34, %v1664_v50 }
 0x5d4   :  { %v1933_v15 = vpop.permute.xlu1 %1932 }
 0x5d5   :  { %v1978_v8 = vadd.f32 %v1933_v15, %v1818_v13 }
 0x5d7   :  { %v1992_v23 = vcombine.low %v1976_v59, %v1978_v8 }
 0x5d8   :  { %v1937_v0 = vpop.permute.xlu1 %1936 }
 0x5d9   :  { %v1999_v52 = vrot.slane %v1992_v23, %v2686_v57 }
 0x5dc   :  { %v1945_v28 = vpop.permute.xlu1 %1944 }
 0x5dd   :  { %v1984_v18 = vadd.f32 %v1945_v28, %v1824_v25 }
 0x5de   :  { %v1775_v33 = vpop.permute.xlu0 %1774 }
 0x5df   :  { %v1819_v48 = vadd.f32 %v1775_v33, %v1659_v54 }
 0x5e0   :  { %v1621_v27 = vpop.permute.xlu1 %1620 }
 0x5e1   :  { %v1662_v26 = vadd.f32 %v1621_v27, %v3560_v9 }
 0x5e2   :  { %v1779_v3 = vpop.permute.xlu0 %1778 }
 0x5e4   :  { %v1629_v58 = vpop.permute.xlu1 %1628 }
 0x5e5   :  { %v1666_v21 = vadd.f32 %v1629_v58, %v3533_v55 }
 0x5e6   :  { %v1787_v10 = vpop.permute.xlu0 %1786 }
 0x5e8   :  { %v1633_v61 = vpop.permute.xlu1 %1632 }
 0x5e9   :  { %v1668_v50 = vadd.f32 %v1633_v61, %v3538_v49 }
 0x5ea   :  { %v1935_v42 = vpop.permute.xlu0 %1934 }
 0x5eb   :  { %v1979_v35 = vadd.f32 %v1935_v42, %v1819_v48 }
 0x5ec   :  { %v1781_v51 = vpop.permute.xlu1 %1780 }
 0x5ed   :  { %v2000_v38 = vcombine.low %v1977_v47, %v1979_v35  ;;  %v1822_v30 = vadd.f32 %v1781_v51, %v1662_v26  ;;  %v1980_v47 = vadd.f32 %v1937_v0, %v1820_v24  ;;  %v1661_v0 = vadd.f32 %v1619_v22, %v3553_v45 }
 0x5ee   :  { %v1939_v60 = vpop.permute.xlu0 %1938  ;;  %v1825_v45 = vadd.f32 %v1787_v10, %v3652_v20 }
 0x5ef   :  { %v2007_v2 = vrot.slane %v2000_v38, %v2686_v57  ;;  %v1821_v1 = vadd.f32 %v1779_v3, %v1661_v0 }
 0x5f0   :  { %v1789_v14 = vpop.permute.xlu1 %1788 }
 0x5f1   :  { %v2024_v32 = vcombine.low %v1999_v52, %v2007_v2  ;;  %v2025_v7 = vcombine.high %v1999_v52, %v2007_v2  ;;  %v1826_v44 = vadd.f32 %v1789_v14, %v1666_v21  ;;  %v1981_v54 = vadd.f32 %v1939_v60, %v1821_v1 }
 0x5f2   :  { %v1947_v31 = vpop.permute.xlu0 %1946 }
 0x5f3   :  { %v1985_v61 = vadd.f32 %v1947_v31, %v1825_v45  ;;  %v2032_v19 = vrot.slane %v2024_v32, %v2906_v40 }
 0x5f4   :  { %v1793_v39 = vpop.permute.xlu1 %1792 }
 0x5f5   :  { %v1828_v58 = vadd.f32 %v1793_v39, %v1668_v50 }
 0x5f6   :  { %v1623_v59 = vpop.permute.xlu0 %1622 }
 0x5f7   :  { %v1663_v55 = vadd.f32 %v1623_v59, %v3605_v17 }
 0x5f8   :  { %v1941_v29 = vpop.permute.xlu1 %1940 }
 0x5f9   :  { %v1982_v63 = vadd.f32 %v1941_v29, %v1822_v30 }
 0x5fa   :  { %v1631_v62 = vpop.permute.xlu0 %1630 }
 0x5fb   :  { %v2008_v11 = vcombine.low %v1980_v47, %v1982_v63  ;;  %v1667_v8 = vadd.f32 %v1631_v62, %v3610_v5  ;;  %v2039_v5 = vrot.slane %v2025_v7, %v2906_v40 }
 0x5fc   :  { %v1949_v37 = vpop.permute.xlu1 %1948 }
 0x5fd   :  { %v1986_v12 = vadd.f32 %v1949_v37, %v1826_v44 }
 0x5fe   :  { %v1635_v15 = vpop.permute.xlu0 %1634 }
 0x5ff   :  { %v2060_v53 = vcombine.low %v1984_v18, %v1986_v12  ;;  %v1669_v32 = vadd.f32 %v1635_v15, %v3615_v4 }
 0x600   :  { %v1953_v36 = vpop.permute.xlu1 %1952 }
 0x601   :  { %v1988_v23 = vadd.f32 %v1953_v36, %v1828_v58  ;;  %v2067_v20 = vrot.slane %v2060_v53, %v2686_v57 }
 0x605   :  { %v1637_v9 = vpop.permute.xlu1 %1636 }
 0x606   :  { %v1670_v34 = vadd.f32 %v1637_v9, %v3583_v46  ;;  %v2015_v46 = vrot.slane %v2008_v11, %v2686_v57 }
 0x609   :  { %v1797_v6 = vpop.permute.xlu1 %1796 }
 0x60a   :  { %v1783_v33 = vpop.permute.xlu0 %1782  ;;  %v1830_v43 = vadd.f32 %v1797_v6, %v1670_v34 }
 0x60b   :  { %v1823_v28 = vadd.f32 %v1783_v33, %v1663_v55 }
 0x60e   :  { %v1791_v16 = vpop.permute.xlu0 %1790 }
 0x60f   :  { %v1827_v17 = vadd.f32 %v1791_v16, %v1667_v8 }
 0x612   :  { %v1795_v27 = vpop.permute.xlu0 %1794 }
 0x613   :  { %v1829_v59 = vadd.f32 %v1795_v27, %v1669_v32 }
 0x616   :  { %v1943_v13 = vpop.permute.xlu0 %1942 }
 0x617   :  { %v1983_v48 = vadd.f32 %v1943_v13, %v1823_v28  ;;  %v1957_v42 = vpop.permute.xlu1 %1956 }
 0x618   :  { %v1990_v35 = vadd.f32 %v1957_v42, %v1830_v43 }
 0x619   :  { %v2016_v22 = vcombine.low %v1981_v54, %v1983_v48 }
 0x61a   :  { %v2076_v51 = vcombine.low %v1988_v23, %v1990_v35  ;;  %v1951_v49 = vpop.permute.xlu0 %1950 }
 0x61b   :  { %v2023_v3 = vrot.slane %v2016_v22, %v2686_v57  ;;  %v1987_v38 = vadd.f32 %v1951_v49, %v1827_v17 }
 0x61c   :  { %v2083_v12 = vrot.slane %v2076_v51, %v2686_v57 }
 0x61d   :  { %v2040_v52 = vcombine.low %v2015_v46, %v2023_v3  ;;  %v2041_v60 = vcombine.high %v2015_v46, %v2023_v3  ;;  %v2068_v2 = vcombine.low %v1985_v61, %v1987_v38 }
 0x61e   :  { %v1955_v14 = vpop.permute.xlu0 %1954 }
 0x61f   :  { %v2055_v10 = vrot.slane %v2041_v60, %v2906_v40  ;;  %v2075_v39 = vrot.slane %v2068_v2, %v2686_v57  ;;  %v2048_v31 = vrot.slane %v2040_v52, %v2906_v40  ;;  %v1989_v11 = vadd.f32 %v1955_v14, %v1829_v59 }
 0x621   :  { %v2092_v56 = vcombine.low %v2067_v20, %v2075_v39  ;;  %v2093_v26 = vcombine.high %v2067_v20, %v2075_v39  ;;  %v2057_v24 = vcombine.high %v2032_v19, %v2048_v31  ;;  %v2058_v30 = vcombine.low %v2039_v5, %v2055_v10 }
 0x622   :  { %v1639_v29 = vpop.permute.xlu0 %1638  ;;  %v2059_v47 = vcombine.high %v2039_v5, %v2055_v10  ;;  %v2056_v21 = vcombine.low %v2032_v19, %v2048_v31 }
 0x623   :  { %2130 = vrot.lane.b32.xlu1 %v2057_v24, %s2485_s6  ;;  %v1671_v63 = vadd.f32 %v1639_v29, %v3636_v41  ;;  %v2107_v4 = vrot.slane %v2093_v26, %v2906_v40  ;;  %v2100_v15 = vrot.slane %v2092_v56, %v2906_v40 }
 0x626   :  { %v1799_v7 = vpop.permute.xlu0 %1798 }
 0x627   :  { %2138 = vrot.lane.b32.xlu1 %v2058_v30, %s2504_s9  ;;  %v1831_v25 = vadd.f32 %v1799_v7, %v1671_v63 }
 0x62a   :  { %v1959_v44 = vpop.permute.xlu0 %1958 }
 0x62b   :  { %v1991_v37 = vadd.f32 %v1959_v44, %v1831_v25  ;;  %2146 = vrot.lane.b32.xlu1 %v2059_v47, %s2505_s10 }
 0x62d   :  { %v2084_v18 = vcombine.low %v1989_v11, %v1991_v37 }
 0x62f   :  { %v2091_v53 = vrot.slane %v2084_v18, %v2686_v57 }
 0x631   :  { %v2108_v62 = vcombine.low %v2083_v12, %v2091_v53  ;;  %v2109_v36 = vcombine.high %v2083_v12, %v2091_v53 }
 0x633   :  { %v2123_v41 = vrot.slane %v2109_v36, %v2906_v40  ;;  %v2116_v33 = vrot.slane %v2108_v62, %v2906_v40 }
 0x635   :  { %v2125_v9 = vcombine.high %v2100_v15, %v2116_v33  ;;  %v2126_v16 = vcombine.low %v2107_v4, %v2123_v41  ;;  %v2127_v27 = vcombine.high %v2107_v4, %v2123_v41  ;;  %v2124_v0 = vcombine.low %v2100_v15, %v2116_v33 }
 0x637   :  { %2132 = vrot.lane.b32.xlu0 %v2125_v9, %s2485_s6 }
 0x63b   :  { %2140 = vrot.lane.b32.xlu0 %v2126_v16, %s2504_s9 }
 0x63f   :  { %2148 = vrot.lane.b32.xlu0 %v2127_v27, %s2505_s10 }
 0x695   :  { %v2131_v55 = vpop.permute.xlu1 %2130 }
 0x696   :  { %v2153_v6 = vsel %vm2152_vm7, %v2056_v21, %v2131_v55 }
 0x699   :  { %v2139_v57 = vpop.permute.xlu1 %2138 }
 0x69a   :  { %v2156_v50 = vsel %vm2155_vm8, %v2153_v6, %v2139_v57 }
 0x69d   :  { %v2147_v34 = vpop.permute.xlu1 %2146 }
 0x69e   :  { %v2159_v1 = vsel %vm2158_vm9, %v2156_v50, %v2147_v34 }
 0x69f   :  { %2161 = vst.msk [vmem:[#allocation11] sm:$0xff] %vm114_vm1, %v2159_v1 }
 0x6a9   :  { %v2133_v40 = vpop.permute.xlu0 %2132 }
 0x6aa   :  { %v2154_v58 = vsel %vm2152_vm7, %v2124_v0, %v2133_v40 }
 0x6ad   :  { %v2141_v28 = vpop.permute.xlu0 %2140 }
 0x6ae   :  { %v2157_v43 = vsel %vm2155_vm8, %v2154_v58, %v2141_v28 }
 0x6b1   :  { %v2149_v13 = vpop.permute.xlu0 %2148 }
 0x6b2   :  { %v2160_v54 = vsel %vm2158_vm9, %v2157_v43, %v2149_v13 }
 0x6b3   :  { %2162 = vst.msk [vmem:[#allocation11 + $0x8] sm:$0xff] %vm114_vm1, %v2160_v54 }
 0x6b4   :  { %2463 = shalt.err (!%p2460_p2)
}
 0x6b5   :  { %s2464_s16 = scalar_lea.hbm %s3710_s5, 256 }
 0x6b6   :  { %p2465_p3 = scmp.ne.s32.totalorder %s3710_s5, %s2464_s16  ;;  %p2468_p4 = scmp.lt.u32.totalorder %s2464_s16, %s3710_s5 }
 0x6b8   :  { %p2470_p5 = pnand %p2468_p4, %p2465_p3 }
 0x6ba   :  { %2473 = shalt.err (!%p2470_p5)
}
 0x6bb   :  { %2174 = dma.vmem_to_hbm [thread:$0]  %s2169_s12, 256, %s3710_s5, [#allocation4], %s2484_s30, %s2484_s30, %s2485_s6  }
 0x6bc   :  { %2480 = dma.done.wait [#allocation4], 256  }
 0x6bd   :  { %2481 = vsyncadd [#allocation4], 4294967040 }
 0x6be   :  { %2178 = vsyncpa [#allocation3], 1 }
 0x6bf   :  { %2179 = vsyncpa [#allocation6], 1 }
 0x6c0   :  { %2180 = vsyncpa [#allocation9], 1 }
 0x6c1   :  { %2181 = vsyncpa [#allocation4], 1 }

</bundles_post_ra>
